<compile_context>
chip_gen: v6e
topology: v6e:2x2x1
jax: 0.10.0
libtpu: 0.0.40
codegen_flags: <defaults>
</compile_context>

<pallas_src>
import functools
import math

import jax
import jax.numpy as jnp
from jax.experimental import pallas as pl
from jax.experimental.pallas import tpu as pltpu

# ----------------------------- model config (small, synthetic) ----------------
B = 2          # batch
S = 8          # sequence length
D = 32         # hidden size
H = 4          # attention heads
HD = D // H    # head dim
FF = 64        # MLP intermediate size
L = 2          # number of encoder layers
VOCAB = 64     # vocab size
PROJ = 16      # text projection dim
LN_EPS = 1e-5


# ----------------------------- shared math -------------------------------------
def _layer_norm(x, g, b):
    mu = jnp.mean(x, axis=-1, keepdims=True)
    var = jnp.mean((x - mu) ** 2, axis=-1, keepdims=True)
    return (x - mu) * jax.lax.rsqrt(var + LN_EPS) * g + b


# ----------------------------- Pallas kernel ------------------------------------
def clip_stream_kernel(eot_ref,                                    # SMEM (B,) int32
                       x_ref,                                      # (B*S, D) f32
                       ln1g_ref, ln1b_ref, wqkv_ref, bqkv_ref,
                       wo_ref, bo_ref, ln2g_ref, ln2b_ref,
                       w1_ref, b1_ref, w2_ref, b2_ref,
                       lnfg_ref, lnfb_ref, wproj_ref,
                       *rest, batch, seq, num_heads, write_hidden):
    if write_hidden:
        hidden_ref, pooled_ref, proj_ref, x_acc = rest
    else:
        pooled_ref, proj_ref, x_acc = rest
        hidden_ref = None

    l = pl.program_id(0)
    n_layers = pl.num_programs(0)

    # Load the embedded tokens into the persistent activation scratch once.
    @pl.when(l == 0)
    def _init():
        x_acc[...] = x_ref[...].astype(jnp.float32)

    x = x_acc[...]                                                  # (B*S, D) f32
    n_tok, dim = x.shape
    hd = dim // num_heads
    scale = 1.0 / math.sqrt(hd)

    # Causal mask, shared by every (batch, head).
    row = jax.lax.broadcasted_iota(jnp.int32, (seq, seq), 0)        # query index
    col = jax.lax.broadcasted_iota(jnp.int32, (seq, seq), 1)        # key index
    causal = (col <= row)[None]                                     # (1, S, S)

    # ---------------- self-attention block (pre-LN, causal) ----------------
    h = _layer_norm(x, ln1g_ref[...], ln1b_ref[...])                # f32
    qkv = jnp.dot(h.astype(jnp.bfloat16), wqkv_ref[...],
                  preferred_element_type=jnp.float32) + bqkv_ref[...]   # (B*S, 3D) f32

    attn = jnp.zeros((n_tok, dim), jnp.float32)
    # TODO(synk): at real dims (H=12, HD=64) tile heads via a grid axis / pad HD
    #             to 128 instead of this trace-time unrolled loop.
    for hh in range(num_heads):
        q_h = qkv[:, hh * hd:(hh + 1) * hd].reshape(batch, seq, hd).astype(jnp.bfloat16)
        k_h = qkv[:, dim + hh * hd:dim + (hh + 1) * hd].reshape(batch, seq, hd).astype(jnp.bfloat16)
        v_h = qkv[:, 2 * dim + hh * hd:2 * dim + (hh + 1) * hd].reshape(batch, seq, hd).astype(jnp.bfloat16)

        s = jnp.einsum("bqd,bkd->bqk", q_h, k_h,
                       preferred_element_type=jnp.float32) * scale        # (B, S, S) f32
        s = jnp.where(causal, s, -1e9)
        s = s - jnp.max(s, axis=-1, keepdims=True)
        p = jnp.exp(s)
        p = p / jnp.sum(p, axis=-1, keepdims=True)                        # exact divide
        ctx_h = jnp.einsum("bqk,bkd->bqd", p.astype(jnp.bfloat16), v_h,
                           preferred_element_type=jnp.float32)            # (B, S, HD)

        # Accumulate this head's contribution straight through its W_o row block
        # (wo_ref is (H, HD, D); leading-axis index -> no packed-sublane slice).
        attn = attn + jnp.dot(ctx_h.reshape(n_tok, hd).astype(jnp.bfloat16),
                              wo_ref[hh], preferred_element_type=jnp.float32)

    x = x + attn + bo_ref[...]

    # ---------------- MLP block (pre-LN, quick_gelu) ----------------
    h = _layer_norm(x, ln2g_ref[...], ln2b_ref[...])
    h1 = jnp.dot(h.astype(jnp.bfloat16), w1_ref[...],
                 preferred_element_type=jnp.float32) + b1_ref[...]
    act = h1 * jax.nn.sigmoid(1.702 * h1)                                 # quick_gelu (f32)
    x = x + jnp.dot(act.astype(jnp.bfloat16), w2_ref[...],
                    preferred_element_type=jnp.float32) + b2_ref[...]

    x_acc[...] = x

    # ---------------- epilogue: only on the last layer ----------------
    @pl.when(l == n_layers - 1)
    def _epilogue():
        hidden = _layer_norm(x, lnfg_ref[...], lnfb_ref[...])             # (B*S, D) f32
        if write_hidden:
            hidden_ref[...] = hidden.astype(hidden_ref.dtype)

        # Pooled output = row at argmax(input_ids) (EOT token), via a one-hot
        # (B, B*S) matmul against the hidden slab (single tiny MXU op).
        row_ids = jax.lax.broadcasted_iota(jnp.int32, (batch, n_tok), 0)
        col_ids = jax.lax.broadcasted_iota(jnp.int32, (batch, n_tok), 1)
        onehot = jnp.zeros((batch, n_tok), jnp.float32)
        for b in range(batch):
            tgt = b * seq + eot_ref[b]                                    # SMEM scalar
            onehot = onehot + jnp.where((row_ids == b) & (col_ids == tgt), 1.0, 0.0)
        pooled = jnp.dot(onehot, hidden, preferred_element_type=jnp.float32)   # (B, D)
        pooled_ref[...] = pooled.astype(pooled_ref.dtype)

        # Text projection (no bias) + L2 normalize.
        proj = jnp.dot(pooled.astype(jnp.bfloat16), wproj_ref[...],
                       preferred_element_type=jnp.float32)                # (B, PROJ)
        sumsq = jnp.maximum(jnp.sum(proj * proj, axis=-1, keepdims=True), 1e-12)
        proj_ref[...] = (proj * jax.lax.rsqrt(sumsq)).astype(proj_ref.dtype)


# ----------------------------- pallas_call wrapper -------------------------------
def fused_forward(eot, x2d, p, *, return_hidden):
    kernel = functools.partial(clip_stream_kernel, batch=B, seq=S, num_heads=H,
                               write_hidden=return_hidden)

    layer3 = lambda l, eot: (l, 0, 0)        # per-layer 3-D weight block
    layer4 = lambda l, eot: (l, 0, 0, 0)     # per-layer 4-D weight block (W_o)
    const2 = lambda l, eot: (0, 0)           # resident 2-D block (same every step)

    in_specs = [
        pl.BlockSpec((B * S, D), const2),            # x2d (resident)
        pl.BlockSpec((None, 1, D), layer3),          # ln1_g
        pl.BlockSpec((None, 1, D), layer3),          # ln1_b
        pl.BlockSpec((None, D, 3 * D), layer3),      # wqkv (bf16, streamed)
        pl.BlockSpec((None, 1, 3 * D), layer3),      # bqkv
        pl.BlockSpec((None, H, HD, D), layer4),      # wo   (bf16, streamed, per-head blocks)
        pl.BlockSpec((None, 1, D), layer3),          # bo
        pl.BlockSpec((None, 1, D), layer3),          # ln2_g
        pl.BlockSpec((None, 1, D), layer3),          # ln2_b
        pl.BlockSpec((None, D, FF), layer3),         # w1   (bf16, streamed)
        pl.BlockSpec((None, 1, FF), layer3),         # b1
        pl.BlockSpec((None, FF, D), layer3),         # w2   (bf16, streamed)
        pl.BlockSpec((None, 1, D), layer3),          # b2
        pl.BlockSpec((1, D), const2),                # lnf_g (resident)
        pl.BlockSpec((1, D), const2),                # lnf_b (resident)
        pl.BlockSpec((D, PROJ), const2),             # w_proj (resident)
    ]

    out_shapes, out_specs = [], []
    if return_hidden:
        out_shapes.append(jax.ShapeDtypeStruct((B * S, D), jnp.float32))
        out_specs.append(pl.BlockSpec((B * S, D), const2))
    out_shapes += [jax.ShapeDtypeStruct((B, D), jnp.float32),
                   jax.ShapeDtypeStruct((B, PROJ), jnp.float32)]
    out_specs += [pl.BlockSpec((B, D), const2),
                  pl.BlockSpec((B, PROJ), const2)]

    return pl.pallas_call(
        kernel,
        out_shape=tuple(out_shapes),
        grid_spec=pltpu.PrefetchScalarGridSpec(
            num_scalar_prefetch=1,                   # eot -> SMEM before the grid runs
            grid=(L,),                               # stream weights layer by layer
            in_specs=in_specs,
            out_specs=tuple(out_specs),
            scratch_shapes=[pltpu.VMEM((B * S, D), jnp.float32)],   # persistent activations
        ),
        compiler_params=pltpu.CompilerParams(
            # L carries the activation scratch -> reduction-like, must be "arbitrary".
            # (At real size, add a leading "parallel" row-tile axis for v7x's 2 TCs.)
            dimension_semantics=("arbitrary",),
            # Explicit scoped-VMEM budget: sized so a CLIP-L bf16 per-layer tile
            # double-buffers within v7x's 64 MiB physical VMEM.
            vmem_limit_bytes=48 * 1024 * 1024,
        ),
    )(eot, x2d,
      p["ln1_g"], p["ln1_b"], p["wqkv"], p["bqkv"], p["wo"], p["bo"],
      p["ln2_g"], p["ln2_b"], p["w1"], p["b1"], p["w2"], p["b2"],
      p["lnf_g"], p["lnf_b"], p["w_proj"])


# ----------------------------- parameter init ------------------------------------
def init_params(key):
    def nrm(k, shape, scale=0.02, dtype=jnp.float32):
        return (scale * jax.random.normal(k, shape)).astype(dtype)

    keys = jax.random.split(key, 7)
    bf16 = jnp.bfloat16
    return {
        "tok_emb": nrm(keys[0], (VOCAB, D)),
        "pos_emb": nrm(keys[1], (S, D)),
        "lnf_g": jnp.ones((1, D), jnp.float32),
        "lnf_b": jnp.zeros((1, D), jnp.float32),
        "w_proj": nrm(keys[2], (D, PROJ), dtype=bf16),
        # per-layer weights stacked along a leading L axis; matmul weights in bf16
        "ln1_g": jnp.ones((L, 1, D), jnp.float32),
        "ln1_b": jnp.zeros((L, 1, D), jnp.float32),
        "wqkv": nrm(keys[3], (L, D, 3 * D), dtype=bf16),
        "bqkv": jnp.zeros((L, 1, 3 * D), jnp.float32),
        "wo": nrm(keys[4], (L, H, HD, D), dtype=bf16),     # (L, D, D) split head-major
        "bo": jnp.zeros((L, 1, D), jnp.float32),
        "ln2_g": jnp.ones((L, 1, D), jnp.float32),
        "ln2_b": jnp.zeros((L, 1, D), jnp.float32),
        "w1": nrm(keys[5], (L, D, FF), dtype=bf16),
        "b1": jnp.zeros((L, 1, FF), jnp.float32),
        "w2": nrm(keys[6], (L, FF, D), dtype=bf16),
        "b2": jnp.zeros((L, 1, D), jnp.float32),
    }


# ----------------------------- full forward (module semantics) --------------------
def clip_text_encoder_forward(input_ids, params, return_projection=True):
    # embeddings (plain-JAX glue: table gather + position add)
    x = params["tok_emb"][input_ids] + params["pos_emb"][None, :, :]     # (B, S, D)
    x2d = x.reshape(B * S, D).astype(jnp.float32)
    eot = jnp.argmax(input_ids, axis=-1).astype(jnp.int32)               # (B,)

    if return_projection:
        pooled, projected = fused_forward(eot, x2d, params, return_hidden=False)
        return dict(pooled_output=pooled, projected_output=projected)

    hidden2d, pooled, _ = fused_forward(eot, x2d, params, return_hidden=True)
    return dict(pooled_output=pooled, hidden_states=hidden2d.reshape(B, S, D))


# ----------------------------- pure-JAX reference (sanity check) ------------------
def reference_forward(input_ids, params):
    def bmm(a, b):   # mirrors kernel numerics: bf16 operands, f32 accumulation
        return jnp.dot(a.astype(jnp.bfloat16), b.astype(jnp.bfloat16),
                       preferred_element_type=jnp.float32)

    x = (params["tok_emb"][input_ids] + params["pos_emb"][None, :, :]).astype(jnp.float32)
    mask = jnp.tril(jnp.ones((S, S), bool))
    for l in range(L):
        h = _layer_norm(x, params["ln1_g"][l, 0], params["ln1_b"][l, 0])
        qkv = (bmm(h.reshape(B * S, D), params["wqkv"][l]).reshape(B, S, 3 * D)
               + params["bqkv"][l, 0])
        q = qkv[..., :D].reshape(B, S, H, HD).transpose(0, 2, 1, 3)
        k = qkv[..., D:2 * D].reshape(B, S, H, HD).transpose(0, 2, 1, 3)
        v = qkv[..., 2 * D:].reshape(B, S, H, HD).transpose(0, 2, 1, 3)
        s = jnp.einsum("bhqd,bhkd->bhqk",
                       q.astype(jnp.bfloat16), k.astype(jnp.bfloat16),
                       preferred_element_type=jnp.float32) / math.sqrt(HD)
        s = jnp.where(mask, s, -1e9)
        p = jax.nn.softmax(s, axis=-1)
        ctx = jnp.einsum("bhqk,bhkd->bhqd",
                         p.astype(jnp.bfloat16), v.astype(jnp.bfloat16),
                         preferred_element_type=jnp.float32)
        ctx = ctx.transpose(0, 2, 1, 3).reshape(B, S, D)
        wo = params["wo"][l].reshape(D, D)
        x = x + bmm(ctx.reshape(B * S, D), wo).reshape(B, S, D) + params["bo"][l, 0]
        h = _layer_norm(x, params["ln2_g"][l, 0], params["ln2_b"][l, 0])
        h1 = bmm(h.reshape(B * S, D), params["w1"][l]).reshape(B, S, FF) + params["b1"][l, 0]
        act = h1 * jax.nn.sigmoid(1.702 * h1)
        x = x + bmm(act.reshape(B * S, FF), params["w2"][l]).reshape(B, S, D) + params["b2"][l, 0]
    hidden = _layer_norm(x, params["lnf_g"][0], params["lnf_b"][0])
    eot = jnp.argmax(input_ids, axis=-1)
    pooled = hidden[jnp.arange(B), eot]
    proj = bmm(pooled, params["w_proj"])
    proj = proj / jnp.linalg.norm(proj, axis=-1, keepdims=True)
    return hidden, pooled, proj


# ----------------------------- main ------------------------------------------------
if __name__ == "__main__":
    key = jax.random.PRNGKey(0)
    k_ids, k_params = jax.random.split(key)
    params = init_params(k_params)

    # synthetic token ids; place a max-id "EOT" token at the end of each sequence
    input_ids = jax.random.randint(k_ids, (B, S), 1, VOCAB - 2)
    input_ids = input_ids.at[:, S - 1].set(VOCAB - 1)

    # return_projection=True path: pooled + normalized projection (no hidden writeback)
    out = clip_text_encoder_forward(input_ids, params, return_projection=True)
    pooled = jax.block_until_ready(out["pooled_output"])
    projected = jax.block_until_ready(out["projected_output"])

    # return_projection=False path: pooled + last_hidden_state
    out_h = clip_text_encoder_forward(input_ids, params, return_projection=False)
    hidden = jax.block_until_ready(out_h["hidden_states"])

    # sanity check against pure-JAX reference (same bf16 weights / casts)
    ref_hidden, ref_pooled, ref_proj = reference_forward(input_ids, params)
    assert jnp.allclose(pooled, ref_pooled, rtol=2e-2, atol=2e-2)
    assert jnp.allclose(projected, ref_proj, rtol=2e-2, atol=2e-2)
    assert jnp.allclose(hidden, ref_hidden, rtol=2e-2, atol=2e-2)

    print("KERNEL_OK")
</pallas_src>

<mosaic_0001>
module attributes {stable_mosaic.version = 11 : i64} {
  func.func @clip_stream_kernel(%arg0: i32, %arg1: memref<2xi32, #tpu.memory_space<smem>>, %arg2: memref<16x32xf32, #tpu.memory_space<vmem>>, %arg3: memref<1x1x32xf32, #tpu.memory_space<vmem>>, %arg4: memref<1x1x32xf32, #tpu.memory_space<vmem>>, %arg5: memref<1x32x96xbf16, #tpu.memory_space<vmem>>, %arg6: memref<1x1x96xf32, #tpu.memory_space<vmem>>, %arg7: memref<1x4x8x32xbf16, #tpu.memory_space<vmem>>, %arg8: memref<1x1x32xf32, #tpu.memory_space<vmem>>, %arg9: memref<1x1x32xf32, #tpu.memory_space<vmem>>, %arg10: memref<1x1x32xf32, #tpu.memory_space<vmem>>, %arg11: memref<1x32x64xbf16, #tpu.memory_space<vmem>>, %arg12: memref<1x1x64xf32, #tpu.memory_space<vmem>>, %arg13: memref<1x64x32xbf16, #tpu.memory_space<vmem>>, %arg14: memref<1x1x32xf32, #tpu.memory_space<vmem>>, %arg15: memref<1x32xf32, #tpu.memory_space<vmem>>, %arg16: memref<1x32xf32, #tpu.memory_space<vmem>>, %arg17: memref<32x16xbf16, #tpu.memory_space<vmem>>, %arg18: memref<2x32xf32, #tpu.memory_space<vmem>>, %arg19: memref<2x16xf32, #tpu.memory_space<vmem>>, %arg20: memref<16x32xf32, #tpu.memory_space<vmem>>) attributes {dimension_semantics = [#tpu.dimension_semantics<arbitrary>], iteration_bounds = array<i64: 2>, scalar_prefetch = 1 : i64, scratch_operands = 1 : i64, tpu.core_type = #tpu.core_type<tc>, window_params = [{pipeline_mode = #tpu.pipeline_mode<synchronous>, transform_indices = @transform_0, window_bounds = array<i64: 16, 32>}, {transform_indices = @transform_1, window_bounds = array<i64: 1, 1, 32>}, {transform_indices = @transform_2, window_bounds = array<i64: 1, 1, 32>}, {transform_indices = @transform_3, window_bounds = array<i64: 1, 32, 96>}, {transform_indices = @transform_4, window_bounds = array<i64: 1, 1, 96>}, {transform_indices = @transform_5, window_bounds = array<i64: 1, 4, 8, 32>}, {transform_indices = @transform_6, window_bounds = array<i64: 1, 1, 32>}, {transform_indices = @transform_7, window_bounds = array<i64: 1, 1, 32>}, {transform_indices = @transform_8, window_bounds = array<i64: 1, 1, 32>}, {transform_indices = @transform_9, window_bounds = array<i64: 1, 32, 64>}, {transform_indices = @transform_10, window_bounds = array<i64: 1, 1, 64>}, {transform_indices = @transform_11, window_bounds = array<i64: 1, 64, 32>}, {transform_indices = @transform_12, window_bounds = array<i64: 1, 1, 32>}, {pipeline_mode = #tpu.pipeline_mode<synchronous>, transform_indices = @transform_13, window_bounds = array<i64: 1, 32>}, {pipeline_mode = #tpu.pipeline_mode<synchronous>, transform_indices = @transform_14, window_bounds = array<i64: 1, 32>}, {pipeline_mode = #tpu.pipeline_mode<synchronous>, transform_indices = @transform_15, window_bounds = array<i64: 32, 16>}, {pipeline_mode = #tpu.pipeline_mode<synchronous>, transform_indices = @transform_16, window_bounds = array<i64: 2, 32>}, {pipeline_mode = #tpu.pipeline_mode<synchronous>, transform_indices = @transform_17, window_bounds = array<i64: 2, 16>}]} {
    %c0_i32 = arith.constant 0 : i32
    %0 = arith.cmpi eq, %arg0, %c0_i32 : i32
    %1 = arith.extui %0 : i1 to i32
    %c0_i32_0 = arith.constant 0 : i32
    %2 = arith.cmpi ne, %1, %c0_i32_0 : i32
    scf.if %2 {
      %c0_94 = arith.constant 0 : index
      %c0_95 = arith.constant 0 : index
      %235 = vector.load %arg2[%c0_94, %c0_95] : memref<16x32xf32, #tpu.memory_space<vmem>>, vector<16x32xf32>
      %c0_96 = arith.constant 0 : index
      %c0_97 = arith.constant 0 : index
      %236 = vector.load %arg20[%c0_96, %c0_97] : memref<16x32xf32, #tpu.memory_space<vmem>>, vector<16x32xf32>
      tpu.vector_store %arg20[%c0_96, %c0_97], %235 {strides = array<i32>} : memref<16x32xf32, #tpu.memory_space<vmem>>, vector<16x32xf32>,
    } else {
    }
    %c0 = arith.constant 0 : index
    %c0_1 = arith.constant 0 : index
    %3 = vector.load %arg20[%c0, %c0_1] : memref<16x32xf32, #tpu.memory_space<vmem>>, vector<16x32xf32>
    %4 = tpu.iota {dimensions = array<i32: 0>} : vector<8x8xi32>
    %5 = tpu.iota {dimensions = array<i32: 1>} : vector<8x8xi32>
    %6 = arith.cmpi sle, %5, %4 : vector<8x8xi32>
    %7 = vector.shape_cast %6 : vector<8x8xi1> to vector<1x8x8xi1>
    %c0_2 = arith.constant 0 : index
    %c0_3 = arith.constant 0 : index
    %c0_4 = arith.constant 0 : index
    %8 = vector.load %arg3[%c0_2, %c0_3, %c0_4] : memref<1x1x32xf32, #tpu.memory_space<vmem>>, vector<1x1x32xf32>
    %9 = vector.shape_cast %8 : vector<1x1x32xf32> to vector<1x32xf32>
    %c0_5 = arith.constant 0 : index
    %c0_6 = arith.constant 0 : index
    %c0_7 = arith.constant 0 : index
    %10 = vector.load %arg4[%c0_5, %c0_6, %c0_7] : memref<1x1x32xf32, #tpu.memory_space<vmem>>, vector<1x1x32xf32>
    %11 = vector.shape_cast %10 : vector<1x1x32xf32> to vector<1x32xf32>
    %cst = arith.constant dense<0.000000e+00> : vector<16xf32>
    %12 = vector.multi_reduction <add>, %3, %cst [1] : vector<16x32xf32> to vector<16xf32>
    %13 = vector.shape_cast %12 : vector<16xf32> to vector<16x1xf32>
    %cst_8 = arith.constant 3.200000e+01 : f32
    %14 = vector.broadcast %cst_8 : f32 to vector<16x1xf32>
    %15 = arith.divf %13, %14 : vector<16x1xf32>
    %16 = vector.broadcast %15 : vector<16x1xf32> to vector<16x32xf32>
    %17 = arith.subf %3, %16 : vector<16x32xf32>
    %18 = arith.mulf %17, %17 : vector<16x32xf32>
    %cst_9 = arith.constant dense<0.000000e+00> : vector<16xf32>
    %19 = vector.multi_reduction <add>, %18, %cst_9 [1] : vector<16x32xf32> to vector<16xf32>
    %20 = vector.shape_cast %19 : vector<16xf32> to vector<16x1xf32>
    %cst_10 = arith.constant 3.200000e+01 : f32
    %21 = vector.broadcast %cst_10 : f32 to vector<16x1xf32>
    %22 = arith.divf %20, %21 : vector<16x1xf32>
    %23 = vector.broadcast %15 : vector<16x1xf32> to vector<16x32xf32>
    %24 = arith.subf %3, %23 : vector<16x32xf32>
    %cst_11 = arith.constant 9.99999974E-6 : f32
    %25 = vector.broadcast %cst_11 : f32 to vector<16x1xf32>
    %26 = arith.addf %22, %25 : vector<16x1xf32>
    %27 = math.rsqrt %26 : vector<16x1xf32>
    %28 = vector.broadcast %27 : vector<16x1xf32> to vector<16x32xf32>
    %29 = arith.mulf %24, %28 : vector<16x32xf32>
    %30 = vector.broadcast %9 : vector<1x32xf32> to vector<16x32xf32>
    %31 = arith.mulf %29, %30 : vector<16x32xf32>
    %32 = vector.broadcast %11 : vector<1x32xf32> to vector<16x32xf32>
    %33 = arith.addf %31, %32 : vector<16x32xf32>
    %34 = arith.truncf %33 : vector<16x32xf32> to vector<16x32xbf16>
    %c0_12 = arith.constant 0 : index
    %c0_13 = arith.constant 0 : index
    %c0_14 = arith.constant 0 : index
    %35 = vector.load %arg5[%c0_12, %c0_13, %c0_14] : memref<1x32x96xbf16, #tpu.memory_space<vmem>>, vector<1x32x96xbf16>
    %36 = vector.shape_cast %35 : vector<1x32x96xbf16> to vector<32x96xbf16>
    %cst_15 = arith.constant dense<0.000000e+00> : vector<16x96xf32>
    %37 = tpu.matmul %34, %36, %cst_15 {dimension_numbers = #tpu.dot_dimension_numbers<[1], [0], [0], [1], [0, 0, 1, 1], [], []>} : vector<16x32xbf16>, vector<32x96xbf16>, vector<16x96xf32> -> vector<16x96xf32>
    %c0_16 = arith.constant 0 : index
    %c0_17 = arith.constant 0 : index
    %c0_18 = arith.constant 0 : index
    %38 = vector.load %arg6[%c0_16, %c0_17, %c0_18] : memref<1x1x96xf32, #tpu.memory_space<vmem>>, vector<1x1x96xf32>
    %39 = vector.shape_cast %38 : vector<1x1x96xf32> to vector<1x96xf32>
    %40 = vector.broadcast %39 : vector<1x96xf32> to vector<16x96xf32>
    %41 = arith.addf %37, %40 : vector<16x96xf32>
    %cst_19 = arith.constant 0.000000e+00 : f32
    %42 = vector.broadcast %cst_19 : f32 to vector<16x32xf32>
    %43 = vector.extract_strided_slice %41 {offsets = [0, 0], sizes = [16, 8], strides = [1, 1]} : vector<16x96xf32> to vector<16x8xf32>
    %44 = vector.shape_cast %43 : vector<16x8xf32> to vector<2x8x8xf32>
    %45 = arith.truncf %44 : vector<2x8x8xf32> to vector<2x8x8xbf16>
    %46 = vector.extract_strided_slice %41 {offsets = [0, 32], sizes = [16, 8], strides = [1, 1]} : vector<16x96xf32> to vector<16x8xf32>
    %47 = vector.shape_cast %46 : vector<16x8xf32> to vector<2x8x8xf32>
    %48 = arith.truncf %47 : vector<2x8x8xf32> to vector<2x8x8xbf16>
    %49 = vector.extract_strided_slice %41 {offsets = [0, 64], sizes = [16, 8], strides = [1, 1]} : vector<16x96xf32> to vector<16x8xf32>
    %50 = vector.shape_cast %49 : vector<16x8xf32> to vector<2x8x8xf32>
    %51 = arith.truncf %50 : vector<2x8x8xf32> to vector<2x8x8xbf16>
    "tpu.trace_start"() <{level = 10 : i32, message = "bqd,bkd->bqk"}> : () -> ()
    %cst_20 = arith.constant dense<0.000000e+00> : vector<2x8x8xf32>
    %52 = tpu.matmul %45, %48, %cst_20 {dimension_numbers = #tpu.dot_dimension_numbers<[2], [2], [1], [1], [0, 0, 0, 1, 1, 1], [0], [0]>} : vector<2x8x8xbf16>, vector<2x8x8xbf16>, vector<2x8x8xf32> -> vector<2x8x8xf32>
    "tpu.trace_stop"() : () -> ()
    %cst_21 = arith.constant 0.353553385 : f32
    %53 = vector.broadcast %cst_21 : f32 to vector<2x8x8xf32>
    %54 = arith.mulf %52, %53 : vector<2x8x8xf32>
    %cst_22 = arith.constant -1.000000e+09 : f32
    %55 = vector.shape_cast %7 : vector<1x8x8xi1> to vector<1x8x8xi1>
    %56 = vector.broadcast %55 : vector<1x8x8xi1> to vector<2x8x8xi1>
    %57 = vector.broadcast %cst_22 : f32 to vector<2x8x8xf32>
    %58 = arith.select %56, %54, %57 : vector<2x8x8xi1>, vector<2x8x8xf32>
    %cst_23 = arith.constant dense<0xFF800000> : vector<2x8xf32>
    %59 = vector.multi_reduction <maximumf>, %58, %cst_23 [2] : vector<2x8x8xf32> to vector<2x8xf32>
    %60 = vector.shape_cast %59 : vector<2x8xf32> to vector<2x8x1xf32>
    %61 = vector.broadcast %60 : vector<2x8x1xf32> to vector<2x8x8xf32>
    %62 = arith.subf %58, %61 : vector<2x8x8xf32>
    %63 = math.exp %62 : vector<2x8x8xf32>
    %cst_24 = arith.constant dense<0.000000e+00> : vector<2x8xf32>
    %64 = vector.multi_reduction <add>, %63, %cst_24 [2] : vector<2x8x8xf32> to vector<2x8xf32>
    %65 = vector.shape_cast %64 : vector<2x8xf32> to vector<2x8x1xf32>
    %66 = vector.broadcast %65 : vector<2x8x1xf32> to vector<2x8x8xf32>
    %67 = arith.divf %63, %66 : vector<2x8x8xf32>
    %68 = arith.truncf %67 : vector<2x8x8xf32> to vector<2x8x8xbf16>
    "tpu.trace_start"() <{level = 10 : i32, message = "bqk,bkd->bqd"}> : () -> ()
    %cst_25 = arith.constant dense<0.000000e+00> : vector<2x8x8xf32>
    %69 = tpu.matmul %68, %51, %cst_25 {dimension_numbers = #tpu.dot_dimension_numbers<[2], [1], [1], [2], [0, 0, 0, 1, 1, 2], [0], [0]>} : vector<2x8x8xbf16>, vector<2x8x8xbf16>, vector<2x8x8xf32> -> vector<2x8x8xf32>
    "tpu.trace_stop"() : () -> ()
    %70 = vector.shape_cast %69 : vector<2x8x8xf32> to vector<16x8xf32>
    %71 = arith.truncf %70 : vector<16x8xf32> to vector<16x8xbf16>
    %c0_26 = arith.constant 0 : index
    %c0_27 = arith.constant 0 : index
    %c0_28 = arith.constant 0 : index
    %c0_29 = arith.constant 0 : index
    %72 = vector.load %arg7[%c0_26, %c0_27, %c0_28, %c0_29] : memref<1x4x8x32xbf16, #tpu.memory_space<vmem>>, vector<1x1x8x32xbf16>
    %73 = vector.shape_cast %72 : vector<1x1x8x32xbf16> to vector<8x32xbf16>
    %cst_30 = arith.constant dense<0.000000e+00> : vector<16x32xf32>
    %74 = tpu.matmul %71, %73, %cst_30 {dimension_numbers = #tpu.dot_dimension_numbers<[1], [0], [0], [1], [0, 0, 1, 1], [], []>} : vector<16x8xbf16>, vector<8x32xbf16>, vector<16x32xf32> -> vector<16x32xf32>
    %75 = arith.addf %42, %74 : vector<16x32xf32>
    %76 = vector.extract_strided_slice %41 {offsets = [0, 8], sizes = [16, 8], strides = [1, 1]} : vector<16x96xf32> to vector<16x8xf32>
    %77 = vector.shape_cast %76 : vector<16x8xf32> to vector<2x8x8xf32>
    %78 = arith.truncf %77 : vector<2x8x8xf32> to vector<2x8x8xbf16>
    %79 = vector.extract_strided_slice %41 {offsets = [0, 40], sizes = [16, 8], strides = [1, 1]} : vector<16x96xf32> to vector<16x8xf32>
    %80 = vector.shape_cast %79 : vector<16x8xf32> to vector<2x8x8xf32>
    %81 = arith.truncf %80 : vector<2x8x8xf32> to vector<2x8x8xbf16>
    %82 = vector.extract_strided_slice %41 {offsets = [0, 72], sizes = [16, 8], strides = [1, 1]} : vector<16x96xf32> to vector<16x8xf32>
    %83 = vector.shape_cast %82 : vector<16x8xf32> to vector<2x8x8xf32>
    %84 = arith.truncf %83 : vector<2x8x8xf32> to vector<2x8x8xbf16>
    "tpu.trace_start"() <{level = 10 : i32, message = "bqd,bkd->bqk"}> : () -> ()
    %cst_31 = arith.constant dense<0.000000e+00> : vector<2x8x8xf32>
    %85 = tpu.matmul %78, %81, %cst_31 {dimension_numbers = #tpu.dot_dimension_numbers<[2], [2], [1], [1], [0, 0, 0, 1, 1, 1], [0], [0]>} : vector<2x8x8xbf16>, vector<2x8x8xbf16>, vector<2x8x8xf32> -> vector<2x8x8xf32>
    "tpu.trace_stop"() : () -> ()
    %cst_32 = arith.constant 0.353553385 : f32
    %86 = vector.broadcast %cst_32 : f32 to vector<2x8x8xf32>
    %87 = arith.mulf %85, %86 : vector<2x8x8xf32>
    %cst_33 = arith.constant -1.000000e+09 : f32
    %88 = vector.shape_cast %7 : vector<1x8x8xi1> to vector<1x8x8xi1>
    %89 = vector.broadcast %88 : vector<1x8x8xi1> to vector<2x8x8xi1>
    %90 = vector.broadcast %cst_33 : f32 to vector<2x8x8xf32>
    %91 = arith.select %89, %87, %90 : vector<2x8x8xi1>, vector<2x8x8xf32>
    %cst_34 = arith.constant dense<0xFF800000> : vector<2x8xf32>
    %92 = vector.multi_reduction <maximumf>, %91, %cst_34 [2] : vector<2x8x8xf32> to vector<2x8xf32>
    %93 = vector.shape_cast %92 : vector<2x8xf32> to vector<2x8x1xf32>
    %94 = vector.broadcast %93 : vector<2x8x1xf32> to vector<2x8x8xf32>
    %95 = arith.subf %91, %94 : vector<2x8x8xf32>
    %96 = math.exp %95 : vector<2x8x8xf32>
    %cst_35 = arith.constant dense<0.000000e+00> : vector<2x8xf32>
    %97 = vector.multi_reduction <add>, %96, %cst_35 [2] : vector<2x8x8xf32> to vector<2x8xf32>
    %98 = vector.shape_cast %97 : vector<2x8xf32> to vector<2x8x1xf32>
    %99 = vector.broadcast %98 : vector<2x8x1xf32> to vector<2x8x8xf32>
    %100 = arith.divf %96, %99 : vector<2x8x8xf32>
    %101 = arith.truncf %100 : vector<2x8x8xf32> to vector<2x8x8xbf16>
    "tpu.trace_start"() <{level = 10 : i32, message = "bqk,bkd->bqd"}> : () -> ()
    %cst_36 = arith.constant dense<0.000000e+00> : vector<2x8x8xf32>
    %102 = tpu.matmul %101, %84, %cst_36 {dimension_numbers = #tpu.dot_dimension_numbers<[2], [1], [1], [2], [0, 0, 0, 1, 1, 2], [0], [0]>} : vector<2x8x8xbf16>, vector<2x8x8xbf16>, vector<2x8x8xf32> -> vector<2x8x8xf32>
    "tpu.trace_stop"() : () -> ()
    %103 = vector.shape_cast %102 : vector<2x8x8xf32> to vector<16x8xf32>
    %104 = arith.truncf %103 : vector<16x8xf32> to vector<16x8xbf16>
    %c0_37 = arith.constant 0 : index
    %c1 = arith.constant 1 : index
    %c0_38 = arith.constant 0 : index
    %c0_39 = arith.constant 0 : index
    %105 = vector.load %arg7[%c0_37, %c1, %c0_38, %c0_39] : memref<1x4x8x32xbf16, #tpu.memory_space<vmem>>, vector<1x1x8x32xbf16>
    %106 = vector.shape_cast %105 : vector<1x1x8x32xbf16> to vector<8x32xbf16>
    %cst_40 = arith.constant dense<0.000000e+00> : vector<16x32xf32>
    %107 = tpu.matmul %104, %106, %cst_40 {dimension_numbers = #tpu.dot_dimension_numbers<[1], [0], [0], [1], [0, 0, 1, 1], [], []>} : vector<16x8xbf16>, vector<8x32xbf16>, vector<16x32xf32> -> vector<16x32xf32>
    %108 = arith.addf %75, %107 : vector<16x32xf32>
    %109 = vector.extract_strided_slice %41 {offsets = [0, 16], sizes = [16, 8], strides = [1, 1]} : vector<16x96xf32> to vector<16x8xf32>
    %110 = vector.shape_cast %109 : vector<16x8xf32> to vector<2x8x8xf32>
    %111 = arith.truncf %110 : vector<2x8x8xf32> to vector<2x8x8xbf16>
    %112 = vector.extract_strided_slice %41 {offsets = [0, 48], sizes = [16, 8], strides = [1, 1]} : vector<16x96xf32> to vector<16x8xf32>
    %113 = vector.shape_cast %112 : vector<16x8xf32> to vector<2x8x8xf32>
    %114 = arith.truncf %113 : vector<2x8x8xf32> to vector<2x8x8xbf16>
    %115 = vector.extract_strided_slice %41 {offsets = [0, 80], sizes = [16, 8], strides = [1, 1]} : vector<16x96xf32> to vector<16x8xf32>
    %116 = vector.shape_cast %115 : vector<16x8xf32> to vector<2x8x8xf32>
    %117 = arith.truncf %116 : vector<2x8x8xf32> to vector<2x8x8xbf16>
    "tpu.trace_start"() <{level = 10 : i32, message = "bqd,bkd->bqk"}> : () -> ()
    %cst_41 = arith.constant dense<0.000000e+00> : vector<2x8x8xf32>
    %118 = tpu.matmul %111, %114, %cst_41 {dimension_numbers = #tpu.dot_dimension_numbers<[2], [2], [1], [1], [0, 0, 0, 1, 1, 1], [0], [0]>} : vector<2x8x8xbf16>, vector<2x8x8xbf16>, vector<2x8x8xf32> -> vector<2x8x8xf32>
    "tpu.trace_stop"() : () -> ()
    %cst_42 = arith.constant 0.353553385 : f32
    %119 = vector.broadcast %cst_42 : f32 to vector<2x8x8xf32>
    %120 = arith.mulf %118, %119 : vector<2x8x8xf32>
    %cst_43 = arith.constant -1.000000e+09 : f32
    %121 = vector.shape_cast %7 : vector<1x8x8xi1> to vector<1x8x8xi1>
    %122 = vector.broadcast %121 : vector<1x8x8xi1> to vector<2x8x8xi1>
    %123 = vector.broadcast %cst_43 : f32 to vector<2x8x8xf32>
    %124 = arith.select %122, %120, %123 : vector<2x8x8xi1>, vector<2x8x8xf32>
    %cst_44 = arith.constant dense<0xFF800000> : vector<2x8xf32>
    %125 = vector.multi_reduction <maximumf>, %124, %cst_44 [2] : vector<2x8x8xf32> to vector<2x8xf32>
    %126 = vector.shape_cast %125 : vector<2x8xf32> to vector<2x8x1xf32>
    %127 = vector.broadcast %126 : vector<2x8x1xf32> to vector<2x8x8xf32>
    %128 = arith.subf %124, %127 : vector<2x8x8xf32>
    %129 = math.exp %128 : vector<2x8x8xf32>
    %cst_45 = arith.constant dense<0.000000e+00> : vector<2x8xf32>
    %130 = vector.multi_reduction <add>, %129, %cst_45 [2] : vector<2x8x8xf32> to vector<2x8xf32>
    %131 = vector.shape_cast %130 : vector<2x8xf32> to vector<2x8x1xf32>
    %132 = vector.broadcast %131 : vector<2x8x1xf32> to vector<2x8x8xf32>
    %133 = arith.divf %129, %132 : vector<2x8x8xf32>
    %134 = arith.truncf %133 : vector<2x8x8xf32> to vector<2x8x8xbf16>
    "tpu.trace_start"() <{level = 10 : i32, message = "bqk,bkd->bqd"}> : () -> ()
    %cst_46 = arith.constant dense<0.000000e+00> : vector<2x8x8xf32>
    %135 = tpu.matmul %134, %117, %cst_46 {dimension_numbers = #tpu.dot_dimension_numbers<[2], [1], [1], [2], [0, 0, 0, 1, 1, 2], [0], [0]>} : vector<2x8x8xbf16>, vector<2x8x8xbf16>, vector<2x8x8xf32> -> vector<2x8x8xf32>
    "tpu.trace_stop"() : () -> ()
    %136 = vector.shape_cast %135 : vector<2x8x8xf32> to vector<16x8xf32>
    %137 = arith.truncf %136 : vector<16x8xf32> to vector<16x8xbf16>
    %c0_47 = arith.constant 0 : index
    %c2 = arith.constant 2 : index
    %c0_48 = arith.constant 0 : index
    %c0_49 = arith.constant 0 : index
    %138 = vector.load %arg7[%c0_47, %c2, %c0_48, %c0_49] : memref<1x4x8x32xbf16, #tpu.memory_space<vmem>>, vector<1x1x8x32xbf16>
    %139 = vector.shape_cast %138 : vector<1x1x8x32xbf16> to vector<8x32xbf16>
    %cst_50 = arith.constant dense<0.000000e+00> : vector<16x32xf32>
    %140 = tpu.matmul %137, %139, %cst_50 {dimension_numbers = #tpu.dot_dimension_numbers<[1], [0], [0], [1], [0, 0, 1, 1], [], []>} : vector<16x8xbf16>, vector<8x32xbf16>, vector<16x32xf32> -> vector<16x32xf32>
    %141 = arith.addf %108, %140 : vector<16x32xf32>
    %142 = vector.extract_strided_slice %41 {offsets = [0, 24], sizes = [16, 8], strides = [1, 1]} : vector<16x96xf32> to vector<16x8xf32>
    %143 = vector.shape_cast %142 : vector<16x8xf32> to vector<2x8x8xf32>
    %144 = arith.truncf %143 : vector<2x8x8xf32> to vector<2x8x8xbf16>
    %145 = vector.extract_strided_slice %41 {offsets = [0, 56], sizes = [16, 8], strides = [1, 1]} : vector<16x96xf32> to vector<16x8xf32>
    %146 = vector.shape_cast %145 : vector<16x8xf32> to vector<2x8x8xf32>
    %147 = arith.truncf %146 : vector<2x8x8xf32> to vector<2x8x8xbf16>
    %148 = vector.extract_strided_slice %41 {offsets = [0, 88], sizes = [16, 8], strides = [1, 1]} : vector<16x96xf32> to vector<16x8xf32>
    %149 = vector.shape_cast %148 : vector<16x8xf32> to vector<2x8x8xf32>
    %150 = arith.truncf %149 : vector<2x8x8xf32> to vector<2x8x8xbf16>
    "tpu.trace_start"() <{level = 10 : i32, message = "bqd,bkd->bqk"}> : () -> ()
    %cst_51 = arith.constant dense<0.000000e+00> : vector<2x8x8xf32>
    %151 = tpu.matmul %144, %147, %cst_51 {dimension_numbers = #tpu.dot_dimension_numbers<[2], [2], [1], [1], [0, 0, 0, 1, 1, 1], [0], [0]>} : vector<2x8x8xbf16>, vector<2x8x8xbf16>, vector<2x8x8xf32> -> vector<2x8x8xf32>
    "tpu.trace_stop"() : () -> ()
    %cst_52 = arith.constant 0.353553385 : f32
    %152 = vector.broadcast %cst_52 : f32 to vector<2x8x8xf32>
    %153 = arith.mulf %151, %152 : vector<2x8x8xf32>
    %cst_53 = arith.constant -1.000000e+09 : f32
    %154 = vector.shape_cast %7 : vector<1x8x8xi1> to vector<1x8x8xi1>
    %155 = vector.broadcast %154 : vector<1x8x8xi1> to vector<2x8x8xi1>
    %156 = vector.broadcast %cst_53 : f32 to vector<2x8x8xf32>
    %157 = arith.select %155, %153, %156 : vector<2x8x8xi1>, vector<2x8x8xf32>
    %cst_54 = arith.constant dense<0xFF800000> : vector<2x8xf32>
    %158 = vector.multi_reduction <maximumf>, %157, %cst_54 [2] : vector<2x8x8xf32> to vector<2x8xf32>
    %159 = vector.shape_cast %158 : vector<2x8xf32> to vector<2x8x1xf32>
    %160 = vector.broadcast %159 : vector<2x8x1xf32> to vector<2x8x8xf32>
    %161 = arith.subf %157, %160 : vector<2x8x8xf32>
    %162 = math.exp %161 : vector<2x8x8xf32>
    %cst_55 = arith.constant dense<0.000000e+00> : vector<2x8xf32>
    %163 = vector.multi_reduction <add>, %162, %cst_55 [2] : vector<2x8x8xf32> to vector<2x8xf32>
    %164 = vector.shape_cast %163 : vector<2x8xf32> to vector<2x8x1xf32>
    %165 = vector.broadcast %164 : vector<2x8x1xf32> to vector<2x8x8xf32>
    %166 = arith.divf %162, %165 : vector<2x8x8xf32>
    %167 = arith.truncf %166 : vector<2x8x8xf32> to vector<2x8x8xbf16>
    "tpu.trace_start"() <{level = 10 : i32, message = "bqk,bkd->bqd"}> : () -> ()
    %cst_56 = arith.constant dense<0.000000e+00> : vector<2x8x8xf32>
    %168 = tpu.matmul %167, %150, %cst_56 {dimension_numbers = #tpu.dot_dimension_numbers<[2], [1], [1], [2], [0, 0, 0, 1, 1, 2], [0], [0]>} : vector<2x8x8xbf16>, vector<2x8x8xbf16>, vector<2x8x8xf32> -> vector<2x8x8xf32>
    "tpu.trace_stop"() : () -> ()
    %169 = vector.shape_cast %168 : vector<2x8x8xf32> to vector<16x8xf32>
    %170 = arith.truncf %169 : vector<16x8xf32> to vector<16x8xbf16>
    %c0_57 = arith.constant 0 : index
    %c3 = arith.constant 3 : index
    %c0_58 = arith.constant 0 : index
    %c0_59 = arith.constant 0 : index
    %171 = vector.load %arg7[%c0_57, %c3, %c0_58, %c0_59] : memref<1x4x8x32xbf16, #tpu.memory_space<vmem>>, vector<1x1x8x32xbf16>
    %172 = vector.shape_cast %171 : vector<1x1x8x32xbf16> to vector<8x32xbf16>
    %cst_60 = arith.constant dense<0.000000e+00> : vector<16x32xf32>
    %173 = tpu.matmul %170, %172, %cst_60 {dimension_numbers = #tpu.dot_dimension_numbers<[1], [0], [0], [1], [0, 0, 1, 1], [], []>} : vector<16x8xbf16>, vector<8x32xbf16>, vector<16x32xf32> -> vector<16x32xf32>
    %174 = arith.addf %141, %173 : vector<16x32xf32>
    %175 = arith.addf %3, %174 : vector<16x32xf32>
    %c0_61 = arith.constant 0 : index
    %c0_62 = arith.constant 0 : index
    %c0_63 = arith.constant 0 : index
    %176 = vector.load %arg8[%c0_61, %c0_62, %c0_63] : memref<1x1x32xf32, #tpu.memory_space<vmem>>, vector<1x1x32xf32>
    %177 = vector.shape_cast %176 : vector<1x1x32xf32> to vector<1x32xf32>
    %178 = vector.broadcast %177 : vector<1x32xf32> to vector<16x32xf32>
    %179 = arith.addf %175, %178 : vector<16x32xf32>
    %c0_64 = arith.constant 0 : index
    %c0_65 = arith.constant 0 : index
    %c0_66 = arith.constant 0 : index
    %180 = vector.load %arg9[%c0_64, %c0_65, %c0_66] : memref<1x1x32xf32, #tpu.memory_space<vmem>>, vector<1x1x32xf32>
    %181 = vector.shape_cast %180 : vector<1x1x32xf32> to vector<1x32xf32>
    %c0_67 = arith.constant 0 : index
    %c0_68 = arith.constant 0 : index
    %c0_69 = arith.constant 0 : index
    %182 = vector.load %arg10[%c0_67, %c0_68, %c0_69] : memref<1x1x32xf32, #tpu.memory_space<vmem>>, vector<1x1x32xf32>
    %183 = vector.shape_cast %182 : vector<1x1x32xf32> to vector<1x32xf32>
    %cst_70 = arith.constant dense<0.000000e+00> : vector<16xf32>
    %184 = vector.multi_reduction <add>, %179, %cst_70 [1] : vector<16x32xf32> to vector<16xf32>
    %185 = vector.shape_cast %184 : vector<16xf32> to vector<16x1xf32>
    %cst_71 = arith.constant 3.200000e+01 : f32
    %186 = vector.broadcast %cst_71 : f32 to vector<16x1xf32>
    %187 = arith.divf %185, %186 : vector<16x1xf32>
    %188 = vector.broadcast %187 : vector<16x1xf32> to vector<16x32xf32>
    %189 = arith.subf %179, %188 : vector<16x32xf32>
    %190 = arith.mulf %189, %189 : vector<16x32xf32>
    %cst_72 = arith.constant dense<0.000000e+00> : vector<16xf32>
    %191 = vector.multi_reduction <add>, %190, %cst_72 [1] : vector<16x32xf32> to vector<16xf32>
    %192 = vector.shape_cast %191 : vector<16xf32> to vector<16x1xf32>
    %cst_73 = arith.constant 3.200000e+01 : f32
    %193 = vector.broadcast %cst_73 : f32 to vector<16x1xf32>
    %194 = arith.divf %192, %193 : vector<16x1xf32>
    %195 = vector.broadcast %187 : vector<16x1xf32> to vector<16x32xf32>
    %196 = arith.subf %179, %195 : vector<16x32xf32>
    %cst_74 = arith.constant 9.99999974E-6 : f32
    %197 = vector.broadcast %cst_74 : f32 to vector<16x1xf32>
    %198 = arith.addf %194, %197 : vector<16x1xf32>
    %199 = math.rsqrt %198 : vector<16x1xf32>
    %200 = vector.broadcast %199 : vector<16x1xf32> to vector<16x32xf32>
    %201 = arith.mulf %196, %200 : vector<16x32xf32>
    %202 = vector.broadcast %181 : vector<1x32xf32> to vector<16x32xf32>
    %203 = arith.mulf %201, %202 : vector<16x32xf32>
    %204 = vector.broadcast %183 : vector<1x32xf32> to vector<16x32xf32>
    %205 = arith.addf %203, %204 : vector<16x32xf32>
    %206 = arith.truncf %205 : vector<16x32xf32> to vector<16x32xbf16>
    %c0_75 = arith.constant 0 : index
    %c0_76 = arith.constant 0 : index
    %c0_77 = arith.constant 0 : index
    %207 = vector.load %arg11[%c0_75, %c0_76, %c0_77] : memref<1x32x64xbf16, #tpu.memory_space<vmem>>, vector<1x32x64xbf16>
    %208 = vector.shape_cast %207 : vector<1x32x64xbf16> to vector<32x64xbf16>
    %cst_78 = arith.constant dense<0.000000e+00> : vector<16x64xf32>
    %209 = tpu.matmul %206, %208, %cst_78 {dimension_numbers = #tpu.dot_dimension_numbers<[1], [0], [0], [1], [0, 0, 1, 1], [], []>} : vector<16x32xbf16>, vector<32x64xbf16>, vector<16x64xf32> -> vector<16x64xf32>
    %c0_79 = arith.constant 0 : index
    %c0_80 = arith.constant 0 : index
    %c0_81 = arith.constant 0 : index
    %210 = vector.load %arg12[%c0_79, %c0_80, %c0_81] : memref<1x1x64xf32, #tpu.memory_space<vmem>>, vector<1x1x64xf32>
    %211 = vector.shape_cast %210 : vector<1x1x64xf32> to vector<1x64xf32>
    %212 = vector.broadcast %211 : vector<1x64xf32> to vector<16x64xf32>
    %213 = arith.addf %209, %212 : vector<16x64xf32>
    %cst_82 = arith.constant 1.702000e+00 : f32
    %214 = vector.broadcast %cst_82 : f32 to vector<16x64xf32>
    %215 = arith.mulf %214, %213 : vector<16x64xf32>
    %216 = arith.negf %215 : vector<16x64xf32>
    %217 = math.exp %216 : vector<16x64xf32>
    %cst_83 = arith.constant 1.000000e+00 : f32
    %218 = vector.broadcast %cst_83 : f32 to vector<16x64xf32>
    %219 = arith.addf %218, %217 : vector<16x64xf32>
    %220 = arith.divf %218, %219 : vector<16x64xf32>
    %221 = arith.mulf %213, %220 : vector<16x64xf32>
    %222 = arith.truncf %221 : vector<16x64xf32> to vector<16x64xbf16>
    %c0_84 = arith.constant 0 : index
    %c0_85 = arith.constant 0 : index
    %c0_86 = arith.constant 0 : index
    %223 = vector.load %arg13[%c0_84, %c0_85, %c0_86] : memref<1x64x32xbf16, #tpu.memory_space<vmem>>, vector<1x64x32xbf16>
    %224 = vector.shape_cast %223 : vector<1x64x32xbf16> to vector<64x32xbf16>
    %cst_87 = arith.constant dense<0.000000e+00> : vector<16x32xf32>
    %225 = tpu.matmul %222, %224, %cst_87 {dimension_numbers = #tpu.dot_dimension_numbers<[1], [0], [0], [1], [0, 0, 1, 1], [], []>} : vector<16x64xbf16>, vector<64x32xbf16>, vector<16x32xf32> -> vector<16x32xf32>
    %226 = arith.addf %179, %225 : vector<16x32xf32>
    %c0_88 = arith.constant 0 : index
    %c0_89 = arith.constant 0 : index
    %c0_90 = arith.constant 0 : index
    %227 = vector.load %arg14[%c0_88, %c0_89, %c0_90] : memref<1x1x32xf32, #tpu.memory_space<vmem>>, vector<1x1x32xf32>
    %228 = vector.shape_cast %227 : vector<1x1x32xf32> to vector<1x32xf32>
    %229 = vector.broadcast %228 : vector<1x32xf32> to vector<16x32xf32>
    %230 = arith.addf %226, %229 : vector<16x32xf32>
    %c0_91 = arith.constant 0 : index
    %c0_92 = arith.constant 0 : index
    %231 = vector.load %arg20[%c0_91, %c0_92] : memref<16x32xf32, #tpu.memory_space<vmem>>, vector<16x32xf32>
    tpu.vector_store %arg20[%c0_91, %c0_92], %230 {strides = array<i32>} : memref<16x32xf32, #tpu.memory_space<vmem>>, vector<16x32xf32>,
    %c1_i32 = arith.constant 1 : i32
    %232 = arith.cmpi eq, %arg0, %c1_i32 : i32
    %233 = arith.extui %232 : i1 to i32
    %c0_i32_93 = arith.constant 0 : i32
    %234 = arith.cmpi ne, %233, %c0_i32_93 : i32
    scf.if %234 {
      %c0_94 = arith.constant 0 : index
      %c0_95 = arith.constant 0 : index
      %235 = vector.load %arg15[%c0_94, %c0_95] : memref<1x32xf32, #tpu.memory_space<vmem>>, vector<1x32xf32>
      %c0_96 = arith.constant 0 : index
      %c0_97 = arith.constant 0 : index
      %236 = vector.load %arg16[%c0_96, %c0_97] : memref<1x32xf32, #tpu.memory_space<vmem>>, vector<1x32xf32>
      %cst_98 = arith.constant dense<0.000000e+00> : vector<16xf32>
      %237 = vector.multi_reduction <add>, %230, %cst_98 [1] : vector<16x32xf32> to vector<16xf32>
      %238 = vector.shape_cast %237 : vector<16xf32> to vector<16x1xf32>
      %cst_99 = arith.constant 3.200000e+01 : f32
      %239 = vector.broadcast %cst_99 : f32 to vector<16x1xf32>
      %240 = arith.divf %238, %239 : vector<16x1xf32>
      %241 = vector.broadcast %240 : vector<16x1xf32> to vector<16x32xf32>
      %242 = arith.subf %230, %241 : vector<16x32xf32>
      %243 = arith.mulf %242, %242 : vector<16x32xf32>
      %cst_100 = arith.constant dense<0.000000e+00> : vector<16xf32>
      %244 = vector.multi_reduction <add>, %243, %cst_100 [1] : vector<16x32xf32> to vector<16xf32>
      %245 = vector.shape_cast %244 : vector<16xf32> to vector<16x1xf32>
      %cst_101 = arith.constant 3.200000e+01 : f32
      %246 = vector.broadcast %cst_101 : f32 to vector<16x1xf32>
      %247 = arith.divf %245, %246 : vector<16x1xf32>
      %248 = vector.broadcast %240 : vector<16x1xf32> to vector<16x32xf32>
      %249 = arith.subf %230, %248 : vector<16x32xf32>
      %cst_102 = arith.constant 9.99999974E-6 : f32
      %250 = vector.broadcast %cst_102 : f32 to vector<16x1xf32>
      %251 = arith.addf %247, %250 : vector<16x1xf32>
      %252 = math.rsqrt %251 : vector<16x1xf32>
      %253 = vector.broadcast %252 : vector<16x1xf32> to vector<16x32xf32>
      %254 = arith.mulf %249, %253 : vector<16x32xf32>
      %255 = vector.broadcast %235 : vector<1x32xf32> to vector<16x32xf32>
      %256 = arith.mulf %254, %255 : vector<16x32xf32>
      %257 = vector.broadcast %236 : vector<1x32xf32> to vector<16x32xf32>
      %258 = arith.addf %256, %257 : vector<16x32xf32>
      %259 = tpu.iota {dimensions = array<i32: 0>} : vector<2x16xi32>
      %260 = tpu.iota {dimensions = array<i32: 1>} : vector<2x16xi32>
      %cst_103 = arith.constant 0.000000e+00 : f32
      %261 = vector.broadcast %cst_103 : f32 to vector<2x16xf32>
      %c0_104 = arith.constant 0 : index
      %262 = memref.load %arg1[%c0_104] : memref<2xi32, #tpu.memory_space<smem>>
      %c0_i32_105 = arith.constant 0 : i32
      %263 = arith.addi %c0_i32_105, %262 : i32
      %c0_i32_106 = arith.constant 0 : i32
      %264 = vector.broadcast %c0_i32_106 : i32 to vector<2x16xi32>
      %265 = arith.cmpi eq, %259, %264 : vector<2x16xi32>
      %266 = vector.broadcast %263 : i32 to vector<2x16xi32>
      %267 = arith.cmpi eq, %260, %266 : vector<2x16xi32>
      %268 = arith.andi %265, %267 : vector<2x16xi1>
      %cst_107 = arith.constant 1.000000e+00 : f32
      %cst_108 = arith.constant 0.000000e+00 : f32
      %269 = vector.broadcast %cst_107 : f32 to vector<2x16xf32>
      %270 = vector.broadcast %cst_108 : f32 to vector<2x16xf32>
      %271 = arith.select %268, %269, %270 : vector<2x16xi1>, vector<2x16xf32>
      %272 = arith.addf %261, %271 : vector<2x16xf32>
      %c1_109 = arith.constant 1 : index
      %273 = memref.load %arg1[%c1_109] : memref<2xi32, #tpu.memory_space<smem>>
      %c8_i32 = arith.constant 8 : i32
      %274 = arith.addi %c8_i32, %273 : i32
      %c1_i32_110 = arith.constant 1 : i32
      %275 = vector.broadcast %c1_i32_110 : i32 to vector<2x16xi32>
      %276 = arith.cmpi eq, %259, %275 : vector<2x16xi32>
      %277 = vector.broadcast %274 : i32 to vector<2x16xi32>
      %278 = arith.cmpi eq, %260, %277 : vector<2x16xi32>
      %279 = arith.andi %276, %278 : vector<2x16xi1>
      %cst_111 = arith.constant 1.000000e+00 : f32
      %cst_112 = arith.constant 0.000000e+00 : f32
      %280 = vector.broadcast %cst_111 : f32 to vector<2x16xf32>
      %281 = vector.broadcast %cst_112 : f32 to vector<2x16xf32>
      %282 = arith.select %279, %280, %281 : vector<2x16xi1>, vector<2x16xf32>
      %283 = arith.addf %272, %282 : vector<2x16xf32>
      %cst_113 = arith.constant dense<0.000000e+00> : vector<2x32xf32>
      %284 = tpu.matmul %283, %258, %cst_113 {dimension_numbers = #tpu.dot_dimension_numbers<[1], [0], [0], [1], [0, 0, 1, 1], [], []>} : vector<2x16xf32>, vector<16x32xf32>, vector<2x32xf32> -> vector<2x32xf32>
      %c0_114 = arith.constant 0 : index
      %c0_115 = arith.constant 0 : index
      %285 = vector.load %arg18[%c0_114, %c0_115] : memref<2x32xf32, #tpu.memory_space<vmem>>, vector<2x32xf32>
      tpu.vector_store %arg18[%c0_114, %c0_115], %284 {strides = array<i32>} : memref<2x32xf32, #tpu.memory_space<vmem>>, vector<2x32xf32>,
      %286 = arith.truncf %284 : vector<2x32xf32> to vector<2x32xbf16>
      %c0_116 = arith.constant 0 : index
      %c0_117 = arith.constant 0 : index
      %287 = vector.load %arg17[%c0_116, %c0_117] : memref<32x16xbf16, #tpu.memory_space<vmem>>, vector<32x16xbf16>
      %cst_118 = arith.constant dense<0.000000e+00> : vector<2x16xf32>
      %288 = tpu.matmul %286, %287, %cst_118 {dimension_numbers = #tpu.dot_dimension_numbers<[1], [0], [0], [1], [0, 0, 1, 1], [], []>} : vector<2x32xbf16>, vector<32x16xbf16>, vector<2x16xf32> -> vector<2x16xf32>
      %289 = arith.mulf %288, %288 : vector<2x16xf32>
      %cst_119 = arith.constant dense<0.000000e+00> : vector<2xf32>
      %290 = vector.multi_reduction <add>, %289, %cst_119 [1] : vector<2x16xf32> to vector<2xf32>
      %291 = vector.shape_cast %290 : vector<2xf32> to vector<2x1xf32>
      %cst_120 = arith.constant 9.99999996E-13 : f32
      %292 = vector.broadcast %cst_120 : f32 to vector<2x1xf32>
      %293 = arith.maximumf %291, %292 : vector<2x1xf32>
      %294 = math.rsqrt %293 : vector<2x1xf32>
      %295 = vector.broadcast %294 : vector<2x1xf32> to vector<2x16xf32>
      %296 = arith.mulf %288, %295 : vector<2x16xf32>
      %c0_121 = arith.constant 0 : index
      %c0_122 = arith.constant 0 : index
      %297 = vector.load %arg19[%c0_121, %c0_122] : memref<2x16xf32, #tpu.memory_space<vmem>>, vector<2x16xf32>
      tpu.vector_store %arg19[%c0_121, %c0_122], %296 {strides = array<i32>} : memref<2x16xf32, #tpu.memory_space<vmem>>, vector<2x16xf32>,
    } else {
    }
    return
  }
  func.func @transform_0(%arg0: i32, %arg1: memref<2xi32, #tpu.memory_space<smem>>) -> (i32, i32) {
    %c0_i32 = arith.constant 0 : i32
    %c0_i32_0 = arith.constant 0 : i32
    %c0_i32_1 = arith.constant 0 : i32
    return %c0_i32, %c0_i32_0 : i32, i32
  }
  func.func @transform_1(%arg0: i32, %arg1: memref<2xi32, #tpu.memory_space<smem>>) -> (i32, i32, i32) {
    %c0_i32 = arith.constant 0 : i32
    %c0_i32_0 = arith.constant 0 : i32
    %c0_i32_1 = arith.constant 0 : i32
    return %arg0, %c0_i32, %c0_i32_0 : i32, i32, i32
  }
  func.func @transform_2(%arg0: i32, %arg1: memref<2xi32, #tpu.memory_space<smem>>) -> (i32, i32, i32) {
    %c0_i32 = arith.constant 0 : i32
    %c0_i32_0 = arith.constant 0 : i32
    %c0_i32_1 = arith.constant 0 : i32
    return %arg0, %c0_i32, %c0_i32_0 : i32, i32, i32
  }
  func.func @transform_3(%arg0: i32, %arg1: memref<2xi32, #tpu.memory_space<smem>>) -> (i32, i32, i32) {
    %c0_i32 = arith.constant 0 : i32
    %c0_i32_0 = arith.constant 0 : i32
    %c0_i32_1 = arith.constant 0 : i32
    return %arg0, %c0_i32, %c0_i32_0 : i32, i32, i32
  }
  func.func @transform_4(%arg0: i32, %arg1: memref<2xi32, #tpu.memory_space<smem>>) -> (i32, i32, i32) {
    %c0_i32 = arith.constant 0 : i32
    %c0_i32_0 = arith.constant 0 : i32
    %c0_i32_1 = arith.constant 0 : i32
    return %arg0, %c0_i32, %c0_i32_0 : i32, i32, i32
  }
  func.func @transform_5(%arg0: i32, %arg1: memref<2xi32, #tpu.memory_space<smem>>) -> (i32, i32, i32, i32) {
    %c0_i32 = arith.constant 0 : i32
    %c0_i32_0 = arith.constant 0 : i32
    %c0_i32_1 = arith.constant 0 : i32
    %c0_i32_2 = arith.constant 0 : i32
    return %arg0, %c0_i32, %c0_i32_0, %c0_i32_1 : i32, i32, i32, i32
  }
  func.func @transform_6(%arg0: i32, %arg1: memref<2xi32, #tpu.memory_space<smem>>) -> (i32, i32, i32) {
    %c0_i32 = arith.constant 0 : i32
    %c0_i32_0 = arith.constant 0 : i32
    %c0_i32_1 = arith.constant 0 : i32
    return %arg0, %c0_i32, %c0_i32_0 : i32, i32, i32
  }
  func.func @transform_7(%arg0: i32, %arg1: memref<2xi32, #tpu.memory_space<smem>>) -> (i32, i32, i32) {
    %c0_i32 = arith.constant 0 : i32
    %c0_i32_0 = arith.constant 0 : i32
    %c0_i32_1 = arith.constant 0 : i32
    return %arg0, %c0_i32, %c0_i32_0 : i32, i32, i32
  }
  func.func @transform_8(%arg0: i32, %arg1: memref<2xi32, #tpu.memory_space<smem>>) -> (i32, i32, i32) {
    %c0_i32 = arith.constant 0 : i32
    %c0_i32_0 = arith.constant 0 : i32
    %c0_i32_1 = arith.constant 0 : i32
    return %arg0, %c0_i32, %c0_i32_0 : i32, i32, i32
  }
  func.func @transform_9(%arg0: i32, %arg1: memref<2xi32, #tpu.memory_space<smem>>) -> (i32, i32, i32) {
    %c0_i32 = arith.constant 0 : i32
    %c0_i32_0 = arith.constant 0 : i32
    %c0_i32_1 = arith.constant 0 : i32
    return %arg0, %c0_i32, %c0_i32_0 : i32, i32, i32
  }
  func.func @transform_10(%arg0: i32, %arg1: memref<2xi32, #tpu.memory_space<smem>>) -> (i32, i32, i32) {
    %c0_i32 = arith.constant 0 : i32
    %c0_i32_0 = arith.constant 0 : i32
    %c0_i32_1 = arith.constant 0 : i32
    return %arg0, %c0_i32, %c0_i32_0 : i32, i32, i32
  }
  func.func @transform_11(%arg0: i32, %arg1: memref<2xi32, #tpu.memory_space<smem>>) -> (i32, i32, i32) {
    %c0_i32 = arith.constant 0 : i32
    %c0_i32_0 = arith.constant 0 : i32
    %c0_i32_1 = arith.constant 0 : i32
    return %arg0, %c0_i32, %c0_i32_0 : i32, i32, i32
  }
  func.func @transform_12(%arg0: i32, %arg1: memref<2xi32, #tpu.memory_space<smem>>) -> (i32, i32, i32) {
    %c0_i32 = arith.constant 0 : i32
    %c0_i32_0 = arith.constant 0 : i32
    %c0_i32_1 = arith.constant 0 : i32
    return %arg0, %c0_i32, %c0_i32_0 : i32, i32, i32
  }
  func.func @transform_13(%arg0: i32, %arg1: memref<2xi32, #tpu.memory_space<smem>>) -> (i32, i32) {
    %c0_i32 = arith.constant 0 : i32
    %c0_i32_0 = arith.constant 0 : i32
    %c0_i32_1 = arith.constant 0 : i32
    return %c0_i32, %c0_i32_0 : i32, i32
  }
  func.func @transform_14(%arg0: i32, %arg1: memref<2xi32, #tpu.memory_space<smem>>) -> (i32, i32) {
    %c0_i32 = arith.constant 0 : i32
    %c0_i32_0 = arith.constant 0 : i32
    %c0_i32_1 = arith.constant 0 : i32
    return %c0_i32, %c0_i32_0 : i32, i32
  }
  func.func @transform_15(%arg0: i32, %arg1: memref<2xi32, #tpu.memory_space<smem>>) -> (i32, i32) {
    %c0_i32 = arith.constant 0 : i32
    %c0_i32_0 = arith.constant 0 : i32
    %c0_i32_1 = arith.constant 0 : i32
    return %c0_i32, %c0_i32_0 : i32, i32
  }
  func.func @transform_16(%arg0: i32, %arg1: memref<2xi32, #tpu.memory_space<smem>>) -> (i32, i32) {
    %c0_i32 = arith.constant 0 : i32
    %c0_i32_0 = arith.constant 0 : i32
    %c0_i32_1 = arith.constant 0 : i32
    return %c0_i32, %c0_i32_0 : i32, i32
  }
  func.func @transform_17(%arg0: i32, %arg1: memref<2xi32, #tpu.memory_space<smem>>) -> (i32, i32) {
    %c0_i32 = arith.constant 0 : i32
    %c0_i32_0 = arith.constant 0 : i32
    %c0_i32_1 = arith.constant 0 : i32
    return %c0_i32, %c0_i32_0 : i32, i32
  }
}

</mosaic_0001>

<bundles_post_ra>
// kernel: tpu_custom_call.1
= control target key start
LH: loop header
LB: loop body
LE: loop exit
PB: predicated region body
PF: predicated region fallthrough
CT: control target
= control target key end

     0   :  { %s4238_s0 = inlined_call_operand.vmem [shape: s32[2], index: 0, kind: input, shape index: {}]   ;;  %s4239_s1 = inlined_call_operand.hbm [shape: f32[16,32], index: 1, kind: input, shape index: {}]   ;;  %s4240_s2 = inlined_call_operand.vmem [shape: f32[2,1,32], index: 2, kind: input, shape index: {}]   ;;  %s4241_s3 = inlined_call_operand.vmem [shape: f32[2,1,32], index: 3, kind: input, shape index: {}]   ;;  %s4242_s4 = inlined_call_operand.vmem [shape: bf16[2,32,96], index: 4, kind: input, shape index: {}]   ;;  %s4243_s5 = inlined_call_operand.vmem [shape: f32[2,1,96], index: 5, kind: input, shape index: {}]   ;;  %s4244_s6 = inlined_call_operand.vmem [shape: bf16[2,4,8,32], index: 6, kind: input, shape index: {}]   ;;  %s4245_s7 = inlined_call_operand.hbm [shape: f32[2,1,32], index: 7, kind: input, shape index: {}]   ;;  %s4246_s8 = inlined_call_operand.hbm [shape: f32[2,1,32], index: 8, kind: input, shape index: {}]   ;;  %s4247_s9 = inlined_call_operand.hbm [shape: f32[2,1,32], index: 9, kind: input, shape index: {}]   ;;  %s4248_s10 = inlined_call_operand.vmem [shape: bf16[2,32,64], index: 10, kind: input, shape index: {}]   ;;  %s4249_s11 = inlined_call_operand.hbm [shape: f32[2,1,64], index: 11, kind: input, shape index: {}]   ;;  %s4250_s12 = inlined_call_operand.vmem [shape: bf16[2,64,32], index: 12, kind: input, shape index: {}]   ;;  %s4251_s13 = inlined_call_operand.hbm [shape: f32[2,1,32], index: 13, kind: input, shape index: {}]   ;;  %s4252_s14 = inlined_call_operand.vmem [shape: f32[1,32], index: 14, kind: input, shape index: {}]   ;;  %s4253_s15 = inlined_call_operand.vmem [shape: f32[1,32], index: 15, kind: input, shape index: {}]   ;;  %s4254_s16 = inlined_call_operand.vmem [shape: bf16[32,16], index: 16, kind: input, shape index: {}]   ;;  %s4255_s17 = inlined_call_operand.hbm [shape: f32[2,32], index: 17, kind: output, shape index: {0}]   ;;  %s4256_s18 = inlined_call_operand.hbm [shape: f32[2,16], index: 18, kind: output, shape index: {1}]  }
   0x1   :  { %4264 = sst [smem:[#allocation29_spill]] %s4238_s0 }
   0x2   :  { %4265 = sst [smem:[#allocation30_spill]] %s4239_s1 }
   0x3   :  { %4266 = sst [smem:[#allocation31_spill]] %s4240_s2 }
   0x4   :  { %4267 = sst [smem:[#allocation32_spill]] %s4242_s4 }
   0x5   :  { %4268 = sst [smem:[#allocation33_spill]] %s4244_s6 }
   0x6   :  { %4269 = sst [smem:[#allocation34_spill]] %s4245_s7 }
   0x7   :  { %4270 = sst [smem:[#allocation35_spill]] %s4247_s9 }
   0x8   :  { %4271 = sst [smem:[#allocation36_spill]] %s4248_s10 }
   0x9   :  { %4272 = sst [smem:[#allocation37_spill]] %s4250_s12 }
   0xa   :  { %4273 = sst [smem:[#allocation38_spill]] %s4252_s14 }
   0xb   :  { %4274 = sst [smem:[#allocation39_spill]] %s4253_s15 }
   0xc   :  { %4275 = sst [smem:[#allocation40_spill]] %s4254_s16 }
   0xd   :  { %4276 = sst [smem:[#allocation41_spill]] %s4255_s17 }
   0xe   :  { %4277 = sst [smem:[#allocation42_spill]] %s4256_s18 }
   0xf   :  { %s4278_s29 = sld [smem:[#allocation29_spill]] }
  0x15   :  { %s24_s12 = sshll.u32 %s4278_s29, 4  ;;  %s25_s12 = int_to_ptr.vmem [resolvable:$true] %s24_s12 }
  0x16   :  { %s3199_s30 = scalar_lea.vmem %s25_s12, 16  ;;  %p3204_p1 = scmp.lt.s32.totalorder %s25_s12, %s25_s12 }
  0x17   :  { %p3200_p0 = scmp.ne.s32.totalorder %s25_s12, %s3199_s30  ;;  %p3205_p2 = scmp.lt.s32.totalorder %s3199_s30, %s3199_s30 }
  0x19   :  { %p3206_p3 = por %p3205_p2, %p3204_p1 }
  0x1b   :  { %p3207_p4 = pnand %p3206_p3, %p3200_p0 }
  0x1d   :  { %3210 = shalt.err (!%p3207_p4)  }
  0x1e   :  { %s3483_s0 = smov [#allocation4]  }
  0x1f   :  { %27 = dma.vmem_to_smem %s25_s12, 16, %s3483_s0, [#allocation3] }
  0x20   :  { %3441 = dma.done.wait [#allocation3], 16 }
  0x21   :  { %3442 = vsyncadd [#allocation3], 4294967280 }
  0x22   :  { %29 = sfence }
  0x23   :  { %30 = vsyncpa [#allocation6], 0 }
  0x24   :  { %31 = vsyncpa [#allocation9], 0 }
  0x25   :  { %33 = vsyncpa [#allocation9 + $0x1], 0 }
  0x26   :  { %34 = vsyncpa [#allocation12], 0 }
  0x27   :  { %36 = vsyncpa [#allocation12 + $0x1], 0 }
  0x28   :  { %37 = vsyncpa [#allocation15], 0 }
  0x29   :  { %39 = vsyncpa [#allocation15 + $0x1], 0 }
  0x2a   :  { %40 = vsyncpa [#allocation7], 0 }
  0x2b   :  { %41 = vsyncpa [#allocation18], 0  ;;  %s3607_s19 = smov 0   ;;  %s3609_s1 = smov 0  }
  0x2c   :  { %s3611_s20 = smov 0   ;;  %s3613_s21 = smov 0  }
  0x2d LB: > { %4279 = sst [smem:[#allocation26_spill]] %s3477_s20  ;;  %s3628_s12 = sadd.s32 1, %s3481_s21   ;;  %s3481_s21 = sphi %s3613_s21, %s4314_s21   ;;  %s3477_s20 = sphi %s3611_s20, %s4316_s20   ;;  %s3473_s1 = sphi %s3609_s1, %s4318_s1   ;;  %s3469_s19 = sphi %s3607_s19, %s4317_s19  }
  0x2e   : > { %4280 = sst [smem:[#allocation27_spill]] %s3628_s12  ;;  %s205_s22 = sadd.s32 1, %s3477_s20 }
  0x2f   : > { %s202_s2 = ssub.s32 %s3481_s21, %s3628_s12  ;;  %p212_p5 = scmp.ne.s32.totalorder %s3477_s20, %s3473_s1 }
  0x30   : > { %p203_p6 = scmp.eq.s32.totalorder %s202_s2, 0  ;;  %p213_p7 = scmp.eq.s32.totalorder %s3481_s21, 0 }
  0x31   : > { %p3076_p8 = scmp.lt.s32.totalorder %s3481_s21, 2  ;;  %s3642_s25 = sand.u32 1, %s3477_s20  }
  0x32   : > { %s3638_s23 = scalar_select %p203_p6, %s3477_s20, %s205_s22  }
  0x33   : > { %p214_p9 = por %p213_p7, %p212_p5  ;;  %s3645_s26 = sshll.u32 %s3481_s21, 4 }
  0x34   : > { %4281 = sst [smem:[#allocation28_spill]] %s3638_s23  ;;  %s562_s30 = scalar_lea.vmem [#allocation8], %s3642_s25 }
  0x35   : > { %s4282_s7 = sld [smem:[#allocation34_spill]]  ;;  %s569_s0 = sshll.u32 %s562_s30, 4  ;;  %s3654_s0 = int_to_ptr.vmem [resolvable:$true] %s569_s0 }
  0x36   : > { %p3656_p10 = pnand %p3076_p8, %p214_p9  ;;  %s4284_s9 = sld [smem:[#allocation35_spill]] }
  0x37   : > { %s4285_s27 = sand.u32 1, %s3481_s21  }
  0x38   : > { %s3668_s28 = scalar_lea.sflag [#allocation9], %s4285_s27  ;;  %p3674_p12 = pneg %p3656_p10 }
  0x3b   : > { %s3651_s29 = scalar_lea.hbm %s4282_s7, %s3645_s26  ;;  %s3216_s24 = scalar_lea.hbm %s4282_s7, 32 }
  0x3c   : > { %s3664_s23 = scalar_lea.hbm %s4284_s9, %s3645_s26  ;;  %s3211_s20 = scalar_lea.hbm %s3651_s29, 16 }
  0x3d   : > { %p3212_p11 = scmp.ne.s32.totalorder %s3651_s29, %s3211_s20  ;;  %p3217_p1 = scmp.lt.s32.totalorder %s3651_s29, %s4282_s7 }
  0x3e   : > { %p3218_p2 = scmp.lt.s32.totalorder %s3216_s24, %s3211_s20 }
  0x3f   : > { %p3214_p13 = pnand %p3674_p12, %p3212_p11 }
  0x40   : > { %p3219_p3 = por %p3218_p2, %p3217_p1 }
  0x41   : > { %p3215_p0 = pneg %p3214_p13 }
  0x43   : > { %p3220_p4 = pnand %p3219_p3, %p3215_p0 }
  0x45   : > { %3223 = shalt.err (!%p3220_p4)
}
  0x46   : > { %s3224_s27 = scalar_lea.vmem %s3654_s0, 16  ;;  %s3484_s15 = smov [#allocation8]  }
  0x47   : > { %p3225_p5 = scmp.ne.s32.totalorder %s3654_s0, %s3224_s27  ;;  %s3229_s18 = sshll.u32 %s3484_s15, 4  ;;  %s3230_s18 = int_to_ptr.vmem [resolvable:$false] %s3229_s18 }
  0x48   : > { %s3231_s12 = scalar_lea.vmem %s3230_s18, 32  ;;  %p3232_p8 = scmp.lt.s32.totalorder %s3654_s0, %s3230_s18 }
  0x49   : > { %p3227_p6 = pnand %p3225_p5, %p3674_p12  ;;  %p3233_p9 = scmp.lt.s32.totalorder %s3231_s12, %s3224_s27 }
  0x4b   : > { %p3228_p7 = pneg %p3227_p6  ;;  %p3234_p11 = por %p3233_p9, %p3232_p8 }
  0x4d   : > { %p3235_p13 = pnand %p3234_p11, %p3228_p7 }
  0x4f   : > { %3238 = shalt.err (!%p3235_p13)
}
  0x50   : > { %3062 = dma.hbm_to_vmem [thread:$0]  (!%p3656_p10), %s3651_s29, 16, %s3654_s0, %s3668_s28  }
  0x51   : > { %s596_s15 = scalar_lea.vmem [#allocation11], %s3642_s25  ;;  %s4287_s20 = sand.u32 1, %s3481_s21  }
  0x52   : > { %s603_s17 = sshll.u32 %s596_s15, 4  ;;  %s3700_s24 = scalar_lea.sflag [#allocation12], %s4287_s20  ;;  %s604_s17 = int_to_ptr.vmem [resolvable:$true] %s603_s17 }
  0x53   : > { %s3239_s2 = scalar_lea.hbm %s3664_s23, 16  ;;  %s3244_s12 = scalar_lea.hbm %s4284_s9, 32 }
  0x54   : > { %p3240_p0 = scmp.ne.s32.totalorder %s3664_s23, %s3239_s2  ;;  %p3245_p3 = scmp.lt.s32.totalorder %s3664_s23, %s4284_s9 }
  0x55   : > { %p3246_p4 = scmp.lt.s32.totalorder %s3244_s12, %s3239_s2 }
  0x56   : > { %p3242_p1 = pnand %p3240_p0, %p3674_p12 }
  0x57   : > { %p3247_p5 = por %p3246_p4, %p3245_p3 }
  0x58   : > { %p3243_p2 = pneg %p3242_p1 }
  0x5a   : > { %p3248_p6 = pnand %p3247_p5, %p3243_p2 }
  0x5c   : > { %3251 = shalt.err (!%p3248_p6)
}
  0x5d   : > { %s3252_s29 = scalar_lea.vmem %s604_s17, 16  ;;  %s3485_s0 = smov [#allocation11]  }
  0x5e   : > { %p3253_p7 = scmp.ne.s32.totalorder %s604_s17, %s3252_s29  ;;  %s3257_s15 = sshll.u32 %s3485_s0, 4  ;;  %s3258_s15 = int_to_ptr.vmem [resolvable:$false] %s3257_s15 }
  0x5f   : > { %s3259_s20 = scalar_lea.vmem %s3258_s15, 32  ;;  %p3260_p11 = scmp.lt.s32.totalorder %s604_s17, %s3258_s15 }
  0x60   : > { %p3255_p8 = pnand %p3253_p7, %p3674_p12  ;;  %p3261_p13 = scmp.lt.s32.totalorder %s3259_s20, %s3252_s29 }
  0x62   : > { %p3256_p9 = pneg %p3255_p8  ;;  %p3262_p0 = por %p3261_p13, %p3260_p11 }
  0x64   : > { %p3263_p1 = pnand %p3262_p0, %p3256_p9 }
  0x66   : > { %3266 = shalt.err (!%p3263_p1)
}
  0x67   : > { %3068 = dma.hbm_to_vmem [thread:$0]  (!%p3656_p10), %s3664_s23, 16, %s604_s17, %s3700_s24  }
  0x68   : > { %s3720_s7 = sadd.s32 4294967295, %s3481_s21   ;;  %p218_p2 = scmp.ne.s32.totalorder %s3473_s1, %s3469_s19 }
  0x69   : > { %p4261_p3 = scmp.eq.s32.totalorder %s3720_s7, 0  ;;  %p2732_p4 = scmp.ge.s32.totalorder %s3481_s21, 1 }
  0x6a   : > { %p490_p5 = scmp.lt.s32.totalorder %s3481_s21, 3  ;;  %s3486_s23 = smov [#allocation5]  }
  0x6b   : > { %p3730_p7 = por %p4261_p3, %p218_p2  ;;  %s502_s17 = sshll.u32 %s3486_s23, 4  ;;  %s503_s17 = int_to_ptr.vmem [resolvable:$true] %s502_s17 }
  0x6c   : > { %p3734_p8 = pnand %p2732_p4, %p490_p5  ;;  %s3744_s21 = scalar_lea.hbm %s4246_s8, %s3645_s26 }
  0x6d   : > { %s4288_s14 = scalar_select %p3730_p7, 1, 0 }
  0x6e   : > { %s4289_s2 = scalar_select %p3734_p8, 1, 0 }
  0x6f   : > { %p3055_p9 = pneg %p3734_p8  ;;  %s579_s12 = scalar_lea.vmem [#allocation10], %s3642_s25 }
  0x70   : > { %s586_s29 = sshll.u32 %s579_s12, 4  ;;  %s3759_s20 = scalar_lea.hbm %s4249_s11, %s3645_s26  ;;  %s3753_s29 = int_to_ptr.vmem [resolvable:$true] %s586_s29 }
  0x71   : > { %p3748_p11 = pnand %p3055_p9, %p4261_p3  ;;  %s3278_s23 = scalar_lea.vmem %s503_s17, 256 }
  0x72   : > { %p3279_p0 = scmp.ne.s32.totalorder %s503_s17, %s3278_s23  ;;  %p3286_p4 = scmp.lt.s32.totalorder %s503_s17, %s503_s17 }
  0x73   : > { %p3269_p13 = pneg %p3748_p11  ;;  %p3287_p5 = scmp.lt.s32.totalorder %s3278_s23, %s3278_s23 }
  0x75   : > { %p3281_p1 = pnand %p3279_p0, %p3269_p13  ;;  %p3288_p9 = por %p3287_p5, %p3286_p4 }
  0x77   : > { %p3282_p2 = pneg %p3281_p1 }
  0x79   : > { %p3289_p6 = pnand %p3288_p9, %p3282_p2 }
  0x7b   : > { %3292 = shalt.err (!%p3289_p6)
}
  0x7c   : > { %s3487_s19 = smov 128   ;;  %s3488_s27 = smov 8  }
  0x7d   : > { %s4291_s15 = sld [smem:[#allocation30_spill]]  ;;  %s3293_s9 = scalar_lea.hbm %s3744_s21, 16 }
  0x7e   : > { %p3294_p13 = scmp.ne.s32.totalorder %s3744_s21, %s3293_s9  ;;  %s3298_s10 = scalar_lea.hbm %s4246_s8, 32 }
  0x7f   : > { %p3299_p6 = scmp.lt.s32.totalorder %s3744_s21, %s4246_s8  ;;  %p3300_p2 = scmp.lt.s32.totalorder %s3298_s10, %s3293_s9 }
  0x80   : > { %p3296_p0 = pnand %p3294_p13, %p3674_p12 }
  0x81   : > { %p3301_p4 = por %p3300_p2, %p3299_p6 }
  0x82   : > { %p3297_p1 = pneg %p3296_p0 }
  0x83   : > { %3058 = dma.hbm_to_vmem [thread:$0]  (!%p3748_p11), %s4291_s15, 256, %s503_s17, [#allocation6], %s3487_s19, %s3487_s19, %s3488_s27  }
  0x84   : > { %p3302_p5 = pnand %p3301_p4, %p3297_p1 }
  0x86   : > { %3305 = shalt.err (!%p3302_p5)
}
  0x87   : > { %s3306_s17 = scalar_lea.vmem %s3753_s29, 16  ;;  %s3489_s18 = smov [#allocation10]  }
  0x88   : > { %p3307_p11 = scmp.ne.s32.totalorder %s3753_s29, %s3306_s17  ;;  %s3311_s16 = sshll.u32 %s3489_s18, 4  ;;  %s3312_s16 = int_to_ptr.vmem [resolvable:$false] %s3311_s16 }
  0x89   : > { %s3313_s19 = scalar_lea.vmem %s3312_s16, 32  ;;  %p3314_p0 = scmp.lt.s32.totalorder %s3753_s29, %s3312_s16 }
  0x8a   : > { %p3309_p9 = pnand %p3307_p11, %p3674_p12  ;;  %p3315_p3 = scmp.lt.s32.totalorder %s3313_s19, %s3306_s17 }
  0x8c   : > { %p3310_p13 = pneg %p3309_p9  ;;  %p3316_p7 = por %p3315_p3, %p3314_p0 }
  0x8e   : > { %p3317_p8 = pnand %p3316_p7, %p3310_p13 }
  0x90   : > { %3320 = shalt.err (!%p3317_p8)
}
  0x91   : > { %3065 = dma.hbm_to_vmem [thread:$0]  (!%p3656_p10), %s3744_s21, 16, %s3753_s29, %s3668_s28  }
  0x92   : > { %s621_s4 = scalar_lea.vmem [#allocation13], %s3642_s25  ;;  %s3321_s9 = scalar_lea.hbm %s3759_s20, 16 }
  0x93   : > { %s628_s6 = sshll.u32 %s621_s4, 4  ;;  %p3322_p1 = scmp.ne.s32.totalorder %s3759_s20, %s3321_s9  ;;  %s629_s6 = int_to_ptr.vmem [resolvable:$true] %s628_s6 }
  0x94   : > { %s3326_s12 = scalar_lea.hbm %s4249_s11, 32  ;;  %p3327_p8 = scmp.lt.s32.totalorder %s3759_s20, %s4249_s11 }
  0x95   : > { %p3324_p3 = pnand %p3322_p1, %p3674_p12  ;;  %p3328_p6 = scmp.lt.s32.totalorder %s3326_s12, %s3321_s9 }
  0x97   : > { %p3325_p7 = pneg %p3324_p3  ;;  %p3329_p2 = por %p3328_p6, %p3327_p8 }
  0x99   : > { %p3330_p4 = pnand %p3329_p2, %p3325_p7 }
  0x9b   : > { %3333 = shalt.err (!%p3330_p4)
}
  0x9c   : > { %s3334_s28 = scalar_lea.vmem %s629_s6, 16  ;;  %s3490_s21 = smov [#allocation13]  }
  0x9d   : > { %p3335_p5 = scmp.ne.s32.totalorder %s629_s6, %s3334_s28  ;;  %s3339_s29 = sshll.u32 %s3490_s21, 4  ;;  %s3340_s29 = int_to_ptr.vmem [resolvable:$false] %s3339_s29 }
  0x9e   : > { %s3341_s23 = scalar_lea.vmem %s3340_s29, 32  ;;  %p3342_p13 = scmp.lt.s32.totalorder %s629_s6, %s3340_s29 }
  0x9f   : > { %p3337_p11 = pnand %p3335_p5, %p3674_p12  ;;  %p3343_p0 = scmp.lt.s32.totalorder %s3341_s23, %s3334_s28 }
  0xa1   : > { %p3338_p9 = pneg %p3337_p11  ;;  %p3344_p1 = por %p3343_p0, %p3342_p13 }
  0xa3   : > { %p3345_p3 = pnand %p3344_p1, %p3338_p9 }
  0xa5   : > { %3348 = shalt.err (!%p3345_p3)
}
  0xa6   : > { %3071 = dma.hbm_to_vmem [thread:$0]  (!%p3656_p10), %s3759_s20, 16, %s629_s6, %s3700_s24  }
  0xa7   : > { %s3811_s16 = scalar_lea.hbm %s4251_s13, %s3645_s26  ;;  %s646_s19 = scalar_lea.vmem [#allocation14], %s3642_s25 }
  0xa8   : > { %s653_s4 = sshll.u32 %s646_s19, 4  ;;  %s644_s9 = scalar_lea.sflag [#allocation15], %s3642_s25  ;;  %s654_s4 = int_to_ptr.vmem [resolvable:$true] %s653_s4 }
  0xa9   : > { %s3349_s10 = scalar_lea.hbm %s3811_s16, 16  ;;  %s3354_s24 = scalar_lea.hbm %s4251_s13, 32 }
  0xaa   : > { %p3350_p7 = scmp.ne.s32.totalorder %s3811_s16, %s3349_s10  ;;  %p3355_p2 = scmp.lt.s32.totalorder %s3811_s16, %s4251_s13 }
  0xab   : > { %p3356_p4 = scmp.lt.s32.totalorder %s3354_s24, %s3349_s10 }
  0xac   : > { %p3352_p8 = pnand %p3350_p7, %p3674_p12 }
  0xad   : > { %p3357_p5 = por %p3356_p4, %p3355_p2 }
  0xae   : > { %p3353_p6 = pneg %p3352_p8 }
  0xb0   : > { %p3358_p11 = pnand %p3357_p5, %p3353_p6 }
  0xb2   : > { %3361 = shalt.err (!%p3358_p11)
}
  0xb3   : > { %s3362_s26 = scalar_lea.vmem %s654_s4, 16  ;;  %s3491_s25 = smov [#allocation14]  }
  0xb4   : > { %p3363_p9 = scmp.ne.s32.totalorder %s654_s4, %s3362_s26  ;;  %s3367_s0 = sshll.u32 %s3491_s25, 4  ;;  %s3368_s0 = int_to_ptr.vmem [resolvable:$false] %s3367_s0 }
  0xb5   : > { %s3369_s15 = scalar_lea.vmem %s3368_s0, 32  ;;  %p3370_p1 = scmp.lt.s32.totalorder %s654_s4, %s3368_s0 }
  0xb6   : > { %p3365_p13 = pnand %p3363_p9, %p3674_p12  ;;  %p3371_p3 = scmp.lt.s32.totalorder %s3369_s15, %s3362_s26 }
  0xb8   : > { %p3366_p0 = pneg %p3365_p13  ;;  %p3372_p7 = por %p3371_p3, %p3370_p1 }
  0xba   : > { %p3373_p8 = pnand %p3372_p7, %p3366_p0 }
  0xbc   : > { %3376 = shalt.err (!%p3373_p8)
}
  0xbd   : > { %3074 = dma.hbm_to_vmem [thread:$0]  (!%p3656_p10), %s3811_s16, 16, %s654_s4, %s644_s9  }
  0xbe   : > { %p4292_p6 = scmp.ne.s32.totalorder %s4289_s2, 0 }
  0xbf   : > { %p4293_p2 = scmp.eq.s32.totalorder (!%p4292_p6), %s3720_s7, 0 }
  0xc0   : > { %662 = sbr.rel (%p4292_p6) target bundleno = 5363 (0x14f3), region = 84 }
  0xc5   : > { %3444 = dma.done.wait (%p4293_p2), [#allocation6], 256   ;;  %p4294_p12 = pmov %p4293_p2 }
  0xc6   : > { %s668_s30 = sand.u32 1, %s3720_s7   ;;  %s3839_s28 = sand.u32 1, %s3473_s1  }
  0xc7   : > { %3446 = vsyncadd (%p4294_p12), [#allocation6], 4294967040  ;;  %s669_s21 = scalar_lea.sflag [#allocation9], %s668_s30  ;;  %s671_s22 = scalar_lea.vmem [#allocation8], %s3839_s28 }
  0xc8   : > { %p4295_p4 = scmp.ne.s32.totalorder %s4288_s14, 0 }
  0xca   : > { %3448 = dma.done.wait (%p4295_p4), %s669_s21, 32  }
  0xcb   : > { %3450 = vsyncadd (%p4295_p4), %s669_s21, 4294967264  ;;  %s685_s29 = scalar_lea.sflag [#allocation12], %s668_s30 }
  0xcc   : > { %3452 = dma.done.wait (%p4295_p4), %s685_s29, 32  }
  0xcd   : > { %3454 = vsyncadd (%p4295_p4), %s685_s29, 4294967264  ;;  %s701_s18 = scalar_lea.sflag [#allocation15], %s3839_s28 }
  0xce   : > { %3456 = dma.done.wait (%p4295_p4), %s701_s18, 16  }
  0xcf   : > { %3458 = vsyncadd (%p4295_p4), %s701_s18, 4294967280  ;;  %p793_p10 = scmp.lt.s32.totalorder %s3720_s7, 1  ;;  %s4296_s10 = sld [smem:[#allocation31_spill]] }
  0xd0   : > { %s4297_s30 = sld [smem:[#allocation32_spill]]  ;;  %p4301_p5 = scmp.ne.s32.totalorder %s3720_s7, 0 }
  0xd1   : > { %s3861_s19 = scalar_select %p793_p10, %s3720_s7, 1 }
  0xd2   : > { %s4298_s4 = sld [smem:[#allocation33_spill]] }
  0xd3   : > { %s798_s20 = scalar_lea.vmem %s4241_s3, %s3861_s19  ;;  %s2809_s14 = sshll.u32 %s3861_s19, 4 }
  0xd4   : > { %s806_s25 = scalar_lea.vmem %s4243_s5, %s3861_s19  ;;  %s4299_s17 = sld [smem:[#allocation36_spill]] }
  0xd5   : > { %s795_s27 = scalar_lea.vmem %s4296_s10, %s3861_s19  ;;  %s2812_s24 = sshll.u32 %s3861_s19, 5 }
  0xd6   : > { %s3879_s21 = scalar_lea.vmem %s4297_s30, %s2809_s14  ;;  %s4300_s6 = sld [smem:[#allocation37_spill]] }
  0xd8   : > { %s3884_s9 = scalar_lea.vmem %s4298_s4, %s2809_s14  ;;  %826 = sbr.rel (%p4301_p5) target bundleno = 223 (0xdf), region = 112 }
  0xda   : > { %s3889_s12 = scalar_lea.vmem %s4299_s17, %s2809_s14 }
  0xdc   : > { %s3895_s26 = scalar_lea.vmem %s4300_s6, %s2812_s24 }
  0xdd   : > { %v827_v0 = vld [vmem:[#allocation5] sm:$0xff]  ;;  %vm829_vm0 = vcmask 261120   ;;  %v828_v1 = vld [vmem:[#allocation5 + $0x8] sm:$0xff] }
  0xde   : > { %830 = vst.msk [vmem:[#allocation2] sm:$0xff] %vm829_vm0, %v827_v0  ;;  %831 = vst.msk [vmem:[#allocation2 + $0x8] sm:$0xff] %vm829_vm0, %v828_v1 }
  0xdf PF: > { %vm841_vm1 = vcmask 261120   ;;  %v3135_v16 = vld [vmem:[%s3879_s21 + $0x8] sm:$0xff]   ;;  %v3492_v17 = vmov 0.0   ;;  %vm3493_vm2 = vmmov 0   ;;  %v3136_v18 = vld [vmem:[%s3879_s21] sm:$0xff]   ;;  %vm958_vm3 = vcmask 64512  }
  0xe0   : > { %2870 = vmatprep.subr.bf16.mxu1 %v3492_v17  ;;  %2874 = vmatprep.mubr.msk.bf16.mxu1 %vm3493_vm2, %v3492_v17  ;;  %v2751_v27 = vld [vmem:[%s795_s27] ss:$0 sm:$0xff]  ;;  %s3494_s27 = smov 96   ;;  %v834_v49 = vlaneseq  ;;  %s3495_s19 = smov 64   ;;  %vm1089_vm5 = vcmask 1043456   ;;  %vm2228_vm6 = vcmask 523264  }
  0xe1   : > { %2871 = vmatpush3.bf16.msra.mxu1 %v3135_v16  ;;  %2884 = vmatprep.subr.bf16.mxu0 %v3492_v17  ;;  %v2752_v31 = vld [vmem:[%s798_s20] ss:$0 sm:$0xff]  ;;  %s3496_s20 = smov 88   ;;  %s3498_s30 = smov 56  }
  0xe2   : > { %2872 = vmatprep.subr.bf16.mxu1 %v3492_v17  ;;  %2886 = vmatprep.mubr.msk.bf16.mxu0 %vm3493_vm2, %v3492_v17  ;;  %v2753_v36 = vld [vmem:[%s806_s25] ss:$0 sm:$0xff]  ;;  %v3957_v50 = vshrl.u32 %v834_v49, 7  ;;  %v3959_v51 = vand.u32 127, %v834_v49  ;;  %s3497_s25 = smov 120   ;;  %s3499_s21 = smov 80  }
  0xe3   : > { %s3500_s29 = smov 112   ;;  %s3501_s18 = smov 48  }
  0xe4   : > { %vm3963_vm4 = vcmp.le.s32.totalorder %v3959_v51, %v3957_v50  ;;  %s3502_s4 = smov 72   ;;  %s3503_s10 = smov 104  }
  0xe5   : > { %v3899_v2 = vld [vmem:[#allocation2] sm:$0xff]  ;;  %v3901_v3 = vld [vmem:[#allocation2 + $0x8] sm:$0xff]  ;;  %2873 = vmatpush3.bf16.msra.mxu1 %v3136_v18  ;;  %s3504_s24 = smov 40   ;;  %s4308_s6 = scalar_lea.vmem [#allocation14], %s3839_s28 }
  0xe6   : > { %v842_v4 = vsel %vm841_vm1, %v3899_v2, 0.0  ;;  %v845_v5 = vsel %vm841_vm1, %v3901_v3, 0.0  ;;  %2878 = vmatprep.subr.bf16.mxu1 %v3492_v17  ;;  %p2795_p11 = scmp.ne.s32.totalorder %s3720_s7, 1 }
  0xe7   : > { %843 = vadd.xlane.f32.xlu0 %v842_v4  ;;  %s4309_s2 = sld [smem:[#allocation40_spill]] (!%p2795_p11) }
  0xe8   : > { %s2798_s23 = sld [smem:[#allocation4 + $0x1]] (!%p2795_p11) }
  0xe9   : > { %s2334_s17 = sld [smem:[#allocation4]] (!%p2795_p11) }
  0xea   : > { %s4310_s15 = sld [smem:[#allocation38_spill]] (!%p2795_p11) }
  0xeb   : > { %846 = vadd.xlane.f32.xlu0 %v845_v5 }
  0xee   : > { %s2342_s16 = sadd.s32 (!%p2795_p11), 8, %s2798_s23 }
 0x170   : > { %v844_v6 = vpop.xlane.xlu0 %843 }
 0x171   : > { %v849_v7 = vmul.f32 0.03125, %v844_v6 }
 0x173   : > { %v851_v8 = vsub.f32 %v3899_v2, %v849_v7 }
 0x174   : > { %v847_v9 = vpop.xlane.xlu0 %846 }
 0x175   : > { %v850_v10 = vmul.f32 0.03125, %v847_v9  ;;  %v853_v11 = vmul.f32 %v851_v8, %v851_v8 }
 0x177   : > { %v852_v12 = vsub.f32 %v3901_v3, %v850_v10  ;;  %v855_v13 = vsel %vm841_vm1, %v853_v11, 0.0 }
 0x178   : > { %856 = vadd.xlane.f32.xlu1 %v855_v13 }
 0x179   : > { %v854_v14 = vmul.f32 %v852_v12, %v852_v12 }
 0x17b   : > { %v858_v15 = vsel %vm841_vm1, %v854_v14, 0.0 }
 0x17c   : > { %859 = vadd.xlane.f32.xlu1 %v858_v15 }
 0x201   : > { %v857_v19 = vpop.xlane.xlu1 %856 }
 0x202   : > { %v861_v20 = vmul.f32 0.03125, %v857_v19 }
 0x204   : > { %v863_v21 = vadd.f32 1e-05, %v861_v20 }
 0x205   : > { %v860_v22 = vpop.xlane.xlu1 %859 }
 0x206   : > { %3143 = vrsqrt.f32 %v863_v21  ;;  %v862_v23 = vmul.f32 0.03125, %v860_v22 }
 0x208   : > { %v864_v24 = vadd.f32 1e-05, %v862_v23 }
 0x20a   : > { %3145 = vrsqrt.f32 %v864_v24 }
 0x213   : > { %v3144_v25 = vpop.eup %3143 }
 0x214   : > { %v867_v26 = vmul.f32 %v3144_v25, %v851_v8 }
 0x216   : > { %v875_v30 = vmul.f32 %v2751_v27, %v867_v26 }
 0x217   : > { %v3146_v28 = vpop.eup %3145 }
 0x218   : > { %v868_v29 = vmul.f32 %v3146_v28, %v852_v12  ;;  %v883_v33 = vadd.f32 %v2752_v31, %v875_v30 }
 0x21a   : > { %v876_v32 = vmul.f32 %v2751_v27, %v868_v29 }
 0x21c   : > { %v884_v34 = vadd.f32 %v2752_v31, %v876_v32 }
 0x21e   : > { %v885_v35 = vpack.c.bf16 %v884_v34, %v883_v33 }
 0x220   : > { %2875 = vmatmul.mubr.msk.bf16.vlgmr.msra.gmra.mxu1 %vm841_vm1, %v885_v35 }
 0x221   : > { %2880 = vmatprep.mubr.msk.bf16.mxu1 %vm3493_vm2, %v3492_v17 }
 0x2e0   : > { %v946_v37 = vpop.f32.mrf.mxu1 }
 0x2e1   : > { %v947_v38 = vadd.f32 %v2753_v36, %v946_v37 }
 0x2e2   : > { %v2876_v39 = vpop.f32.mrf.mxu1 }
 0x2e3   : > { %v3939_v40 = vpack.c.bf16 %v947_v38, %v947_v38 }
 0x2e4   : > { %v949_v41 = vpop.f32.mrf.mxu1 }
 0x2e5   : > { %v950_v42 = vadd.f32 %v2753_v36, %v949_v41  ;;  %956 = vrot.lane.b32.xlu0 %v3939_v40, %s3494_s27 }
 0x2e6   : > { %v2877_v43 = vpop.f32.mrf.mxu1 }
 0x2e7   : > { %v3942_v44 = vpack.c.bf16 %v950_v42, %v950_v42 }
 0x2e9   : > { %1006 = vrot.lane.b32.xlu1 %v3942_v44, %s3494_s27 }
 0x357   : > { %v957_v45 = vpop.permute.xlu0 %956 }
 0x358   : > { %v963_v46 = vsel %vm958_vm3, %v957_v45, 0 }
 0x359   : > { %2879 = vmatpush3.bf16.xpose.msra.mxu1 %v963_v46 }
 0x35a   : > { %2890 = vmatprep.subr.bf16.mxu1 %v3492_v17 }
 0x35b   : > { %v1007_v47 = vpop.permute.xlu1 %1006 }
 0x35c   : > { %v1012_v48 = vsel %vm958_vm3, %v1007_v47, 0 }
 0x35d   : > { %2885 = vmatpush3.bf16.xpose.msra.mxu0 %v1012_v48 }
 0x35e   : > { %2896 = vmatprep.subr.bf16.mxu0 %v3492_v17 }
 0x360   : > { %2881 = vmatmul.mubr.msk.bf16.vlgmr.msra.gmra.mxu1 %vm958_vm3, %v3939_v40 }
 0x361   : > { %2892 = vmatprep.mubr.msk.bf16.mxu1 %vm3493_vm2, %v3492_v17 }
 0x364   : > { %2887 = vmatmul.mubr.msk.bf16.vlgmr.msra.gmra.mxu0 %vm958_vm3, %v3942_v44 }
 0x365   : > { %2898 = vmatprep.mubr.msk.bf16.mxu0 %vm3493_vm2, %v3492_v17 }
 0x420   : > { %v999_v52 = vpop.f32.mrf.mxu1 }
 0x421   : > { %v1054_v54 = vmul.f32 0.35355338, %v999_v52 }
 0x422   : > { %v2882_v55 = vpop.f32.mrf.mxu1 }
 0x423   : > { %v1058_v56 = vsel %vm3963_vm4, %v1054_v54, -1e+09 }
 0x424   : > { %v1002_v57 = vpop.f32.mrf.mxu1  ;;  %v1048_v58 = vpop.f32.mrf.mxu0  ;;  %v1060_v59 = vsel %vm958_vm3, %v1058_v56, -inf }
 0x425   : > { %v1055_v60 = vmul.f32 0.35355338, %v1048_v58  ;;  %1061 = vmax.xlane.f32.xlu1 %v1060_v59 }
 0x426   : > { %v2883_v61 = vpop.f32.mrf.mxu1  ;;  %v2888_v62 = vpop.f32.mrf.mxu0 }
 0x427   : > { %v1059_v63 = vsel %vm3963_vm4, %v1055_v60, -1e+09 }
 0x428   : > { %v1051_v0 = vpop.f32.mrf.mxu0  ;;  %v1063_v1 = vsel %vm958_vm3, %v1059_v63, -inf }
 0x429   : > { %1064 = vmax.xlane.f32.xlu0 %v1063_v1 }
 0x42a   : > { %v2889_v4 = vpop.f32.mrf.mxu0 }
 0x436   : > { %1133 = vrot.lane.b32.xlu1 %v3942_v44, %s3495_s19 }
 0x43a   : > { %1185 = vrot.lane.b32.xlu1 %v3939_v40, %s3496_s20 }
 0x4ae   : > { %v1062_v5 = vpop.xlane.xlu1 %1061 }
 0x4af   : > { %v1066_v6 = vsub.f32 %v1058_v56, %v1062_v5 }
 0x4b1   : > { %v1068_v7 = vmul.f32 1.442695, %v1066_v6 }
 0x4b2   : > { %v1065_v8 = vpop.xlane.xlu0 %1064  ;;  %v1134_v9 = vpop.permute.xlu1 %1133 }
 0x4b3   : > { %3147 = vpow2.f32 %v1068_v7  ;;  %v1067_v10 = vsub.f32 %v1059_v63, %v1065_v8  ;;  %v1139_v11 = vsel %vm1089_vm5, %v1134_v9, 0 }
 0x4b4   : > { %2897 = vmatpush3.bf16.msra.mxu0 %v1139_v11 }
 0x4b5   : > { %v1070_v12 = vmul.f32 1.442695, %v1067_v10  ;;  %2908 = vmatprep.subr.bf16.mxu0 %v3492_v17 }
 0x4b6   : > { %v1186_v18 = vpop.permute.xlu1 %1185 }
 0x4b7   : > { %3149 = vpow2.f32 %v1070_v12  ;;  %v1191_v27 = vsel %vm958_vm3, %v1186_v18, 0 }
 0x4c0   : > { %v3148_v13 = vpop.eup %3147 }
 0x4c1   : > { %v1072_v14 = vsel %vm958_vm3, %v3148_v13, 0.0 }
 0x4c2   : > { %1073 = vadd.xlane.f32.xlu0 %v1072_v14 }
 0x4c4   : > { %v3150_v15 = vpop.eup %3149 }
 0x4c5   : > { %v1075_v16 = vsel %vm958_vm3, %v3150_v15, 0.0 }
 0x4c6   : > { %1076 = vadd.xlane.f32.xlu1 %v1075_v16 }
 0x4d7   : > { %1235 = vrot.lane.b32.xlu1 %v3942_v44, %s3496_s20  ;;  %s4311_s20 = sld [smem:[#allocation39_spill]] (!%p2795_p11) }
 0x4d8   : > { %1084 = vrot.lane.b32.xlu0 %v3939_v40, %s3495_s19 }
 0x4db   : > { %1233 = vrot.lane.b32.xlu1 %v3942_v44, %s3497_s25 }
 0x4dc   : > { %1183 = vrot.lane.b32.xlu0 %v3939_v40, %s3497_s25 }
 0x54b   : > { %v1074_v19 = vpop.xlane.xlu0 %1073 }
 0x54c   : > { %3151 = vrcp.f32 %v1074_v19 }
 0x54f   : > { %v1085_v20 = vpop.permute.xlu0 %1084  ;;  %v1077_v21 = vpop.xlane.xlu1 %1076 }
 0x550   : > { %v1091_v22 = vsel %vm1089_vm5, %v1085_v20, 0  ;;  %3153 = vrcp.f32 %v1077_v21  ;;  %v1182_v21 = vld [vmem:[%s3884_s9] sm:$0xf] }
 0x551   : > { %2891 = vmatpush3.bf16.msra.mxu1 %v1091_v22 }
 0x552   : > { %2902 = vmatprep.subr.bf16.mxu1 %v3492_v17 }
 0x553   : > { %v1236_v29 = vpop.permute.xlu1 %1235  ;;  %v1184_v32 = vpop.permute.xlu0 %1183 }
 0x554   : > { %v1241_v31 = vsel %vm958_vm3, %v1236_v29, 0  ;;  %v2765_v29 = vld [vmem:[%s3884_s9 + $0x4] sm:$0xf] }
 0x557   : > { %v1234_v33 = vpop.permute.xlu1 %1233 }
 0x559   : > { %v3152_v23 = vpop.eup %3151 }
 0x55a   : > { %v1079_v24 = vmul.f32 %v3152_v23, %v3148_v13 }
 0x55c   : > { %v1082_v25 = vpack.c.bf16 %v1079_v24, %v1079_v24  ;;  %v1461_v24 = vsel %vm1089_vm5, %v1182_v21, 0 }
 0x55d   : > { %v3154_v26 = vpop.eup %3153 }
 0x55e   : > { %2893 = vmatmul.mubr.msk.bf16.vlgmr.msra.gmra.mxu1 %vm958_vm3, %v1082_v25  ;;  %v1081_v28 = vmul.f32 %v3154_v26, %v3150_v15 }
 0x55f   : > { %2903 = vmatpush3.bf16.xpose.msra.mxu1 %v1191_v27  ;;  %2904 = vmatprep.mubr.msk.bf16.mxu1 %vm3493_vm2, %v3492_v17 }
 0x560   : > { %v1083_v30 = vpack.c.bf16 %v1081_v28, %v1081_v28  ;;  %2914 = vmatprep.subr.bf16.mxu1 %v3492_v17 }
 0x562   : > { %2899 = vmatmul.mubr.msk.bf16.vlgmr.msra.gmra.mxu0 %vm958_vm3, %v1083_v30  ;;  %v1414_v30 = vsel %vm1089_vm5, %v2765_v29, 0 }
 0x563   : > { %2909 = vmatpush3.bf16.xpose.msra.mxu0 %v1241_v31  ;;  %2910 = vmatprep.mubr.msk.bf16.mxu0 %vm3493_vm2, %v3492_v17 }
 0x564   : > { %2920 = vmatprep.subr.bf16.mxu0 %v3492_v17 }
 0x566   : > { %2905 = vmatmul.mubr.msk.bf16.vlgmr.msra.gmra.mxu1 %vm958_vm3, %v1184_v32 }
 0x567   : > { %2916 = vmatprep.mubr.msk.bf16.mxu1 %vm3493_vm2, %v3492_v17 }
 0x56a   : > { %2911 = vmatmul.mubr.msk.bf16.vlgmr.msra.gmra.mxu0 %vm958_vm3, %v1234_v33 }
 0x56b   : > { %2922 = vmatprep.mubr.msk.bf16.mxu0 %vm3493_vm2, %v3492_v17 }
 0x61e   : > { %v4001_v34 = vpop.f32.mrf.mxu1 }
 0x620   : > { %v2894_v35 = vpop.f32.mrf.mxu1 }
 0x622   : > { %v1130_v36 = vpop.f32.mrf.mxu1  ;;  %v4003_v37 = vpop.f32.mrf.mxu0 }
 0x623   : > { %v1181_v38 = vpack.c.bf16 %v4003_v37, %v4001_v34 }
 0x624   : > { %v2895_v39 = vpop.f32.mrf.mxu1  ;;  %v2900_v41 = vpop.f32.mrf.mxu0 }
 0x626   : > { %v1178_v42 = vpop.f32.mrf.mxu0  ;;  %v1227_v43 = vpop.f32.mrf.mxu1 }
 0x627   : > { %v1283_v45 = vmul.f32 0.35355338, %v1227_v43 }
 0x628   : > { %v2901_v46 = vpop.f32.mrf.mxu0  ;;  %v2906_v47 = vpop.f32.mrf.mxu1 }
 0x629   : > { %v1285_v48 = vsel %vm3963_vm4, %v1283_v45, -1e+09 }
 0x62a   : > { %v1230_v49 = vpop.f32.mrf.mxu1  ;;  %v1277_v52 = vpop.f32.mrf.mxu0  ;;  %v1287_v54 = vsel %vm958_vm3, %v1285_v48, -inf }
 0x62b   : > { %v1284_v55 = vmul.f32 0.35355338, %v1277_v52  ;;  %1288 = vmax.xlane.f32.xlu0 %v1287_v54 }
 0x62c   : > { %v2907_v56 = vpop.f32.mrf.mxu1  ;;  %v2912_v57 = vpop.f32.mrf.mxu0 }
 0x62d   : > { %v1286_v58 = vsel %vm3963_vm4, %v1284_v55, -1e+09 }
 0x62e   : > { %v1280_v59 = vpop.f32.mrf.mxu0  ;;  %v1290_v60 = vsel %vm958_vm3, %v1286_v58, -inf }
 0x62f   : > { %1291 = vmax.xlane.f32.xlu1 %v1290_v60 }
 0x630   : > { %v2913_v61 = vpop.f32.mrf.mxu0 }
 0x640   : > { %1359 = vrot.lane.b32.xlu1 %v3942_v44, %s3498_s30 }
 0x644   : > { %1506 = vrot.lane.b32.xlu1 %v3939_v40, %s3499_s21 }
 0x648   : > { %1556 = vrot.lane.b32.xlu1 %v3942_v44, %s3499_s21 }
 0x64c   : > { %1554 = vrot.lane.b32.xlu1 %v3942_v44, %s3500_s29 }
 0x6b4   : > { %v1289_v62 = vpop.xlane.xlu0 %1288 }
 0x6b5   : > { %v1293_v63 = vsub.f32 %v1285_v48, %v1289_v62 }
 0x6b7   : > { %v1295_v0 = vmul.f32 1.442695, %v1293_v63 }
 0x6b8   : > { %v1292_v1 = vpop.xlane.xlu1 %1291 }
 0x6b9   : > { %3155 = vpow2.f32 %v1295_v0  ;;  %v1294_v4 = vsub.f32 %v1286_v58, %v1292_v1 }
 0x6bb   : > { %v1297_v5 = vmul.f32 1.442695, %v1294_v4 }
 0x6bc   : > { %v1360_v6 = vpop.permute.xlu1 %1359 }
 0x6bd   : > { %3157 = vpow2.f32 %v1297_v5  ;;  %v1365_v7 = vsel %vm1089_vm5, %v1360_v6, 0 }
 0x6be   : > { %2921 = vmatpush3.bf16.msra.mxu0 %v1365_v7 }
 0x6bf   : > { %2932 = vmatprep.subr.bf16.mxu0 %v3492_v17 }
 0x6c0   : > { %v1507_v25 = vpop.permute.xlu1 %1506 }
 0x6c4   : > { %v1557_v26 = vpop.permute.xlu1 %1556 }
 0x6c5   : > { %v1562_v27 = vsel %vm958_vm3, %v1557_v26, 0 }
 0x6c6   : > { %v3156_v8 = vpop.eup %3155 }
 0x6c7   : > { %v1299_v9 = vsel %vm958_vm3, %v3156_v8, 0.0 }
 0x6c8   : > { %1300 = vadd.xlane.f32.xlu0 %v1299_v9  ;;  %v1555_v28 = vpop.permute.xlu1 %1554 }
 0x6ca   : > { %v3158_v10 = vpop.eup %3157 }
 0x6cb   : > { %v1302_v11 = vsel %vm958_vm3, %v3158_v10, 0.0 }
 0x6cc   : > { %1303 = vadd.xlane.f32.xlu0 %v1302_v11 }
 0x6e2   : > { %1311 = vrot.lane.b32.xlu0 %v3939_v40, %s3498_s30 }
 0x6e6   : > { %1504 = vrot.lane.b32.xlu0 %v3939_v40, %s3500_s29 }
 0x751   : > { %v1301_v12 = vpop.xlane.xlu0 %1300 }
 0x752   : > { %3159 = vrcp.f32 %v1301_v12 }
 0x755   : > { %v1304_v13 = vpop.xlane.xlu0 %1303 }
 0x756   : > { %3161 = vrcp.f32 %v1304_v13 }
 0x759   : > { %v1312_v14 = vpop.permute.xlu0 %1311 }
 0x75a   : > { %v1317_v15 = vsel %vm1089_vm5, %v1312_v14, 0 }
 0x75b   : > { %2915 = vmatpush3.bf16.msra.mxu1 %v1317_v15 }
 0x75c   : > { %2926 = vmatprep.subr.bf16.mxu1 %v3492_v17 }
 0x75d   : > { %v1505_v43 = vpop.permute.xlu0 %1504 }
 0x75f   : > { %v3160_v16 = vpop.eup %3159 }
 0x760   : > { %v1306_v18 = vmul.f32 %v3160_v16, %v3156_v8 }
 0x762   : > { %v1309_v19 = vpack.c.bf16 %v1306_v18, %v1306_v18 }
 0x763   : > { %v3162_v20 = vpop.eup %3161 }
 0x764   : > { %2917 = vmatmul.mubr.msk.bf16.vlgmr.msra.gmra.mxu1 %vm958_vm3, %v1309_v19  ;;  %v1308_v22 = vmul.f32 %v3162_v20, %v3158_v10 }
 0x765   : > { %2928 = vmatprep.mubr.msk.bf16.mxu1 %vm3493_vm2, %v3492_v17  ;;  %2927 = vmatpush3.bf16.msra.mxu1 %v1414_v30 }
 0x766   : > { %v1310_v23 = vpack.c.bf16 %v1308_v22, %v1308_v22  ;;  %2938 = vmatprep.subr.bf16.mxu1 %v3492_v17 }
 0x768   : > { %2923 = vmatmul.mubr.msk.bf16.vlgmr.msra.gmra.mxu0 %vm958_vm3, %v1310_v23 }
 0x769   : > { %2933 = vmatpush3.bf16.msra.mxu0 %v1461_v24  ;;  %2934 = vmatprep.mubr.msk.bf16.mxu0 %vm3493_vm2, %v3492_v17 }
 0x76a   : > { %2944 = vmatprep.subr.bf16.mxu0 %v3492_v17 }
 0x770   : > { %2935 = vmatmul.mubr.msk.bf16.vlgmr.msra.gmra.mxu0 %vm958_vm3, %v1181_v38  ;;  %v1512_v38 = vsel %vm958_vm3, %v1507_v25, 0 }
 0x771   : > { %2945 = vmatpush3.bf16.xpose.msra.mxu0 %v1562_v27  ;;  %2946 = vmatprep.mubr.msk.bf16.mxu0 %vm3493_vm2, %v3492_v17 }
 0x772   : > { %2956 = vmatprep.subr.bf16.mxu0 %v3492_v17 }
 0x778   : > { %2947 = vmatmul.mubr.msk.bf16.vlgmr.msra.gmra.mxu0 %vm958_vm3, %v1555_v28 }
 0x779   : > { %2958 = vmatprep.mubr.msk.bf16.mxu0 %vm3493_vm2, %v3492_v17 }
 0x824   : > { %v1353_v31 = vpop.f32.mrf.mxu1 }
 0x826   : > { %v2918_v32 = vpop.f32.mrf.mxu1 }
 0x828   : > { %v1356_v33 = vpop.f32.mrf.mxu1  ;;  %v1401_v34 = vpop.f32.mrf.mxu0 }
 0x829   : > { %v1407_v35 = vpack.c.bf16 %v1401_v34, %v1353_v31 }
 0x82a   : > { %v2919_v36 = vpop.f32.mrf.mxu1  ;;  %v2924_v37 = vpop.f32.mrf.mxu0 }
 0x82b   : > { %2929 = vmatmul.mubr.msk.bf16.vlgmr.msra.gmra.mxu1 %vm958_vm3, %v1407_v35  ;;  %v2772_v37 = vld [vmem:[%s3884_s9 + $0x8] sm:$0xf] }
 0x82c   : > { %2939 = vmatpush3.bf16.xpose.msra.mxu1 %v1512_v38  ;;  %v1404_v39 = vpop.f32.mrf.mxu0  ;;  %2940 = vmatprep.mubr.msk.bf16.mxu1 %vm3493_vm2, %v3492_v17  ;;  %v1735_v38 = vsel %vm1089_vm5, %v2772_v37, 0 }
 0x82d   : > { %2950 = vmatprep.subr.bf16.mxu1 %v3492_v17 }
 0x82e   : > { %v2925_v41 = vpop.f32.mrf.mxu0 }
 0x830   : > { %v4053_v42 = vpop.f32.mrf.mxu0 }
 0x832   : > { %v2936_v45 = vpop.f32.mrf.mxu0 }
 0x833   : > { %2941 = vmatmul.mubr.msk.bf16.vlgmr.msra.gmra.mxu1 %vm958_vm3, %v1505_v43 }
 0x834   : > { %v4056_v46 = vpop.f32.mrf.mxu0  ;;  %2952 = vmatprep.mubr.msk.bf16.mxu1 %vm3493_vm2, %v3492_v17 }
 0x836   : > { %v2937_v47 = vpop.f32.mrf.mxu0 }
 0x838   : > { %v1598_v48 = vpop.f32.mrf.mxu0 }
 0x839   : > { %v1605_v49 = vmul.f32 0.35355338, %v1598_v48 }
 0x83a   : > { %v2948_v52 = vpop.f32.mrf.mxu0 }
 0x83b   : > { %v1607_v54 = vsel %vm3963_vm4, %v1605_v49, -1e+09 }
 0x83c   : > { %v1601_v55 = vpop.f32.mrf.mxu0  ;;  %v1611_v56 = vsel %vm958_vm3, %v1607_v54, -inf }
 0x83d   : > { %1612 = vmax.xlane.f32.xlu1 %v1611_v56 }
 0x83e   : > { %v2949_v57 = vpop.f32.mrf.mxu0 }
 0x84e   : > { %1680 = vrot.lane.b32.xlu1 %v3942_v44, %s3501_s18 }
 0x852   : > { %1782 = vrot.lane.b32.xlu1 %v3939_v40, %s3502_s4 }
 0x856   : > { %1832 = vrot.lane.b32.xlu1 %v3942_v44, %s3502_s4 }
 0x85a   : > { %1830 = vrot.lane.b32.xlu1 %v3942_v44, %s3503_s10 }
 0x8c6   : > { %v1613_v58 = vpop.xlane.xlu1 %1612 }
 0x8c7   : > { %v1615_v61 = vsub.f32 %v1607_v54, %v1613_v58 }
 0x8c9   : > { %v1618_v62 = vmul.f32 1.442695, %v1615_v61 }
 0x8ca   : > { %v1681_v59 = vpop.permute.xlu1 %1680 }
 0x8cb   : > { %v1686_v60 = vsel %vm1089_vm5, %v1681_v59, 0  ;;  %3163 = vpow2.f32 %v1618_v62 }
 0x8cc   : > { %2957 = vmatpush3.bf16.msra.mxu0 %v1686_v60 }
 0x8cd   : > { %2968 = vmatprep.subr.bf16.mxu0 %v3492_v17 }
 0x8ce   : > { %v1783_v23 = vpop.permute.xlu1 %1782 }
 0x8cf   : > { %v1788_v25 = vsel %vm958_vm3, %v1783_v23, 0 }
 0x8d2   : > { %v1833_v52 = vpop.permute.xlu1 %1832 }
 0x8d3   : > { %v1838_v57 = vsel %vm958_vm3, %v1833_v52, 0 }
 0x8d6   : > { %v1831_v60 = vpop.permute.xlu1 %1830 }
 0x8d8   : > { %v3164_v11 = vpop.eup %3163 }
 0x8d9   : > { %v1623_v13 = vsel %vm958_vm3, %v3164_v11, 0.0 }
 0x8eb   : > { %v4071_v63 = vpop.f32.mrf.mxu1 }
 0x8ed   : > { %v2930_v0 = vpop.f32.mrf.mxu1 }
 0x8ef   : > { %v4073_v1 = vpop.f32.mrf.mxu1 }
 0x8f1   : > { %v2931_v4 = vpop.f32.mrf.mxu1 }
 0x8f3   : > { %v1548_v5 = vpop.f32.mrf.mxu1 }
 0x8f4   : > { %v1604_v6 = vmul.f32 0.35355338, %v1548_v5 }
 0x8f5   : > { %v2942_v7 = vpop.f32.mrf.mxu1 }
 0x8f6   : > { %v1606_v8 = vsel %vm3963_vm4, %v1604_v6, -1e+09  ;;  %v1498_v6 = vadd.f32 %v4053_v42, %v4071_v63 }
 0x8f7   : > { %v1551_v9 = vpop.f32.mrf.mxu1  ;;  %v1608_v10 = vsel %vm958_vm3, %v1606_v8, -inf }
 0x8f8   : > { %1609 = vmax.xlane.f32.xlu0 %v1608_v10  ;;  %v1501_v10 = vadd.f32 %v4056_v46, %v4073_v1 }
 0x8f9   : > { %v2943_v12 = vpop.f32.mrf.mxu1 }
 0x8fc   : > { %1624 = vadd.xlane.f32.xlu0 %v1623_v13 }
 0x981   : > { %v1610_v14 = vpop.xlane.xlu0 %1609 }
 0x982   : > { %v1614_v15 = vsub.f32 %v1606_v8, %v1610_v14 }
 0x984   : > { %v1616_v16 = vmul.f32 1.442695, %v1614_v15 }
 0x985   : > { %v1625_v18 = vpop.xlane.xlu0 %1624 }
 0x986   : > { %3165 = vpow2.f32 %v1616_v16 }
 0x987   : > { %3167 = vrcp.f32 %v1625_v18 }
 0x993   : > { %v3166_v19 = vpop.eup %3165 }
 0x994   : > { %v3168_v20 = vpop.eup %3167  ;;  %v1620_v21 = vsel %vm958_vm3, %v3166_v19, 0.0 }
 0x995   : > { %1621 = vadd.xlane.f32.xlu0 %v1620_v21  ;;  %v1629_v22 = vmul.f32 %v3168_v20, %v3164_v11 }
 0x997   : > { %v1631_v24 = vpack.c.bf16 %v1629_v22, %v1629_v22 }
 0x999   : > { %2959 = vmatmul.mubr.msk.bf16.vlgmr.msra.gmra.mxu0 %vm958_vm3, %v1631_v24 }
 0x99a   : > { %2969 = vmatpush3.bf16.xpose.msra.mxu0 %v1788_v25  ;;  %2970 = vmatprep.mubr.msk.bf16.mxu0 %vm3493_vm2, %v3492_v17 }
 0x99b   : > { %2980 = vmatprep.subr.bf16.mxu0 %v3492_v17 }
 0x9ab   : > { %1632 = vrot.lane.b32.xlu0 %v3939_v40, %s3501_s18 }
 0x9af   : > { %1780 = vrot.lane.b32.xlu0 %v3939_v40, %s3503_s10 }
 0xa1e   : > { %v1622_v26 = vpop.xlane.xlu0 %1621 }
 0xa1f   : > { %3169 = vrcp.f32 %v1622_v26 }
 0xa22   : > { %v1633_v27 = vpop.permute.xlu0 %1632 }
 0xa23   : > { %v1638_v28 = vsel %vm1089_vm5, %v1633_v27, 0 }
 0xa24   : > { %2951 = vmatpush3.bf16.msra.mxu1 %v1638_v28 }
 0xa25   : > { %2962 = vmatprep.subr.bf16.mxu1 %v3492_v17 }
 0xa26   : > { %v1781_v29 = vpop.permute.xlu0 %1780 }
 0xa27   : > { %2971 = vmatmul.mubr.msk.bf16.vlgmr.msra.gmra.mxu0 %vm958_vm3, %v1781_v29 }
 0xa28   : > { %2982 = vmatprep.mubr.msk.bf16.mxu0 %vm3493_vm2, %v3492_v17 }
 0xa2c   : > { %v3170_v30 = vpop.eup %3169 }
 0xa2d   : > { %v1627_v31 = vmul.f32 %v3170_v30, %v3166_v19 }
 0xa2f   : > { %v1630_v32 = vpack.c.bf16 %v1627_v31, %v1627_v31 }
 0xa31   : > { %2953 = vmatmul.mubr.msk.bf16.vlgmr.msra.gmra.mxu1 %vm958_vm3, %v1630_v32  ;;  %v2778_v32 = vld [vmem:[%s3884_s9 + $0xc] sm:$0xf]  ;;  %s4306_s9 = scalar_lea.vmem [#allocation11], %s3839_s28 }
 0xa32   : > { %2964 = vmatprep.mubr.msk.bf16.mxu1 %vm3493_vm2, %v3492_v17  ;;  %2963 = vmatpush3.bf16.msra.mxu1 %v1735_v38 }
 0xa33   : > { %2974 = vmatprep.subr.bf16.mxu1 %v3492_v17 }
 0xa59   : > { %v1722_v33 = vpop.f32.mrf.mxu0 }
 0xa5b   : > { %v2960_v34 = vpop.f32.mrf.mxu0 }
 0xa5d   : > { %v1725_v35 = vpop.f32.mrf.mxu0 }
 0xa5f   : > { %v2961_v36 = vpop.f32.mrf.mxu0 }
 0xae7   : > { %v1824_v39 = vpop.f32.mrf.mxu0 }
 0xae8   : > { %v1880_v41 = vmul.f32 0.35355338, %v1824_v39 }
 0xae9   : > { %v2972_v43 = vpop.f32.mrf.mxu0 }
 0xaea   : > { %v1882_v45 = vsel %vm3963_vm4, %v1880_v41, -1e+09 }
 0xaeb   : > { %v1827_v47 = vpop.f32.mrf.mxu0  ;;  %v1884_v48 = vsel %vm958_vm3, %v1882_v45, -inf }
 0xaec   : > { %1885 = vmax.xlane.f32.xlu0 %v1884_v48 }
 0xaed   : > { %v2973_v49 = vpop.f32.mrf.mxu0 }
 0xaee   : > { %v2780_v49 = vld [vmem:[%s671_s22] ss:$0 sm:$0xff]  ;;  %s4305_s22 = scalar_lea.vmem [#allocation10], %s3839_s28 }
 0xaf1   : > { %v1674_v54 = vpop.f32.mrf.mxu1 }
 0xaf2   : > { %v1728_v55 = vpack.c.bf16 %v1722_v33, %v1674_v54  ;;  %v2011_v33 = vsel %vm1089_vm5, %v2778_v32, 0 }
 0xaf3   : > { %v2954_v56 = vpop.f32.mrf.mxu1 }
 0xaf4   : > { %2965 = vmatmul.mubr.msk.bf16.vlgmr.msra.gmra.mxu1 %vm958_vm3, %v1728_v55 }
 0xaf5   : > { %2975 = vmatpush3.bf16.xpose.msra.mxu1 %v1838_v57  ;;  %v1677_v58 = vpop.f32.mrf.mxu1  ;;  %2976 = vmatprep.mubr.msk.bf16.mxu1 %vm3493_vm2, %v3492_v17 }
 0xaf6   : > { %2986 = vmatprep.subr.bf16.mxu1 %v3492_v17 }
 0xaf7   : > { %v2955_v59 = vpop.f32.mrf.mxu1 }
 0xafc   : > { %2977 = vmatmul.mubr.msk.bf16.vlgmr.msra.gmra.mxu1 %vm958_vm3, %v1831_v60 }
 0xafd   : > { %2988 = vmatprep.mubr.msk.bf16.mxu1 %vm3493_vm2, %v3492_v17 }
 0xb75   : > { %v1886_v61 = vpop.xlane.xlu0 %1885 }
 0xb76   : > { %v1890_v62 = vsub.f32 %v1882_v45, %v1886_v61 }
 0xb78   : > { %v1892_v0 = vmul.f32 1.442695, %v1890_v62 }
 0xb7a   : > { %3171 = vpow2.f32 %v1892_v0 }
 0xb87   : > { %v3172_v4 = vpop.eup %3171 }
 0xb88   : > { %v1896_v5 = vsel %vm958_vm3, %v3172_v4, 0.0 }
 0xb89   : > { %1897 = vadd.xlane.f32.xlu0 %v1896_v5 }
 0xbb4   : > { %v1771_v7 = vpop.f32.mrf.mxu1 }
 0xbb5   : > { %v1778_v8 = vadd.f32 %v1771_v7, %v1498_v6 }
 0xbb6   : > { %v2966_v9 = vpop.f32.mrf.mxu1 }
 0xbb8   : > { %v1774_v11 = vpop.f32.mrf.mxu1 }
 0xbb9   : > { %v4116_v12 = vadd.f32 %v1774_v11, %v1501_v10  ;;  %v3137_v11 = vld [vmem:[%s3889_s12 + $0x8] sm:$0xff]  }
 0xbba   : > { %v2967_v13 = vpop.f32.mrf.mxu1 }
 0xbbc   : > { %v1874_v14 = vpop.f32.mrf.mxu1 }
 0xbbd   : > { %v1881_v15 = vmul.f32 0.35355338, %v1874_v14 }
 0xbbe   : > { %v2978_v16 = vpop.f32.mrf.mxu1 }
 0xbbf   : > { %v1883_v18 = vsel %vm3963_vm4, %v1881_v15, -1e+09 }
 0xbc0   : > { %v1877_v19 = vpop.f32.mrf.mxu1  ;;  %v1887_v20 = vsel %vm958_vm3, %v1883_v18, -inf }
 0xbc1   : > { %1888 = vmax.xlane.f32.xlu1 %v1887_v20 }
 0xbc2   : > { %v2979_v42 = vpop.f32.mrf.mxu1 }
 0xbd2   : > { %1956 = vrot.lane.b32.xlu1 %v3942_v44, %s3504_s24 }
 0xc12   : > { %v1898_v24 = vpop.xlane.xlu0 %1897 }
 0xc4a   : > { %v1889_v63 = vpop.xlane.xlu1 %1888 }
 0xc4b   : > { %v1891_v46 = vsub.f32 %v1883_v18, %v1889_v63  ;;  %v2781_v63 = vld [vmem:[%s4305_s22] ss:$0 sm:$0xff] }
 0xc4d   : > { %v1894_v1 = vmul.f32 1.442695, %v1891_v46 }
 0xc4e   : > { %v1957_v21 = vpop.permute.xlu1 %1956 }
 0xc4f   : > { %3173 = vpow2.f32 %v1894_v1  ;;  %v1962_v22 = vsel %vm1089_vm5, %v1957_v21, 0 }
 0xc50   : > { %2987 = vmatpush3.bf16.msra.mxu1 %v1962_v22  ;;  %3175 = vrcp.f32 %v1898_v24  ;;  %v2782_v22 = vld [vmem:[%s4306_s9] ss:$0 sm:$0xff] }
 0xc51   : > { %2998 = vmatprep.subr.bf16.mxu1 %v3492_v17 }
 0xc5c   : > { %v3174_v53 = vpop.eup %3173 }
 0xc5d   : > { %v1899_v23 = vsel %vm958_vm3, %v3174_v53, 0.0  ;;  %v3176_v25 = vpop.eup %3175 }
 0xc5e   : > { %1900 = vadd.xlane.f32.xlu0 %v1899_v23  ;;  %v1903_v26 = vmul.f32 %v3176_v25, %v3172_v4 }
 0xc60   : > { %v1906_v29 = vpack.c.bf16 %v1903_v26, %v1903_v26  ;;  %v3140_v26 = vld [vmem:[%s3895_s26 + $0x10] sm:$0xff]  }
 0xc74   : > { %1908 = vrot.lane.b32.xlu0 %v3939_v40, %s3504_s24 }
 0xce7   : > { %v1901_v44 = vpop.xlane.xlu0 %1900 }
 0xce8   : > { %3177 = vrcp.f32 %v1901_v44  ;;  %v3139_v44 = vld [vmem:[%s3895_s26 + $0x18] sm:$0xff]  }
 0xceb   : > { %v1909_v27 = vpop.permute.xlu0 %1908 }
 0xcec   : > { %v1914_v28 = vsel %vm1089_vm5, %v1909_v27, 0  ;;  %v3141_v27 = vld [vmem:[%s3895_s26 + $0x8] sm:$0xff]  }
 0xced   : > { %2981 = vmatpush3.bf16.msra.mxu0 %v1914_v28  ;;  %v3142_v28 = vld [vmem:[%s3895_s26] sm:$0xff]  }
 0xcee   : > { %2992 = vmatprep.subr.bf16.mxu0 %v3492_v17 }
 0xcf0   : > { %2983 = vmatmul.mubr.msk.bf16.vlgmr.msra.gmra.mxu0 %vm958_vm3, %v1906_v29 }
 0xcf1   : > { %2994 = vmatprep.mubr.msk.bf16.mxu0 %vm3493_vm2, %v3492_v17  ;;  %2993 = vmatpush3.bf16.msra.mxu0 %v2011_v33 }
 0xcf2   : > { %3006 = vmatprep.subr.bf16.mxu0 %v3492_v17 }
 0xcf5   : > { %v3178_v40 = vpop.eup %3177 }
 0xcf6   : > { %v1905_v30 = vmul.f32 %v3178_v40, %v3174_v53 }
 0xcf8   : > { %v1907_v31 = vpack.c.bf16 %v1905_v30, %v1905_v30 }
 0xcfa   : > { %2989 = vmatmul.mubr.msk.bf16.vlgmr.msra.gmra.mxu1 %vm958_vm3, %v1907_v31 }
 0xcfb   : > { %3002 = vmatprep.mubr.msk.bf16.mxu1 %vm3493_vm2, %v3492_v17  ;;  %2999 = vmatpush3.bf16.msra.mxu1 %v3137_v11 }
 0xcfc   : > { %3000 = vmatprep.subr.bf16.mxu1 %v3492_v17 }
 0xdb0   : > { %v1950_v34 = vpop.f32.mrf.mxu0 }
 0xdb2   : > { %v2984_v35 = vpop.f32.mrf.mxu0 }
 0xdb4   : > { %v1953_v36 = vpop.f32.mrf.mxu0 }
 0xdb6   : > { %v2985_v37 = vpop.f32.mrf.mxu0 }
 0xdba   : > { %v1998_v38 = vpop.f32.mrf.mxu1 }
 0xdbb   : > { %v2004_v39 = vpack.c.bf16 %v1998_v38, %v1950_v34 }
 0xdbc   : > { %v2990_v41 = vpop.f32.mrf.mxu1 }
 0xdbd   : > { %2995 = vmatmul.mubr.msk.bf16.vlgmr.msra.gmra.mxu0 %vm958_vm3, %v2004_v39 }
 0xdbe   : > { %v2001_v43 = vpop.f32.mrf.mxu1  ;;  %3014 = vmatprep.mubr.msk.bf16.mxu0 %vm3493_vm2, %v3492_v17  ;;  %3007 = vmatpush3.bf16.msra.mxu0 %v3139_v44 }
 0xdbf   : > { %3008 = vmatprep.subr.bf16.mxu0 %v3492_v17 }
 0xdc0   : > { %v2991_v45 = vpop.f32.mrf.mxu1 }
 0xdc2   : > { %3009 = vmatpush3.bf16.msra.mxu0 %v3140_v26 }
 0xdc3   : > { %3010 = vmatprep.subr.bf16.mxu0 %v3492_v17 }
 0xdc6   : > { %3011 = vmatpush3.bf16.msra.mxu0 %v3141_v27 }
 0xdc7   : > { %3012 = vmatprep.subr.bf16.mxu0 %v3492_v17 }
 0xdca   : > { %3013 = vmatpush3.bf16.msra.mxu0 %v3142_v28 }
 0xe7d   : > { %v2047_v47 = vpop.f32.mrf.mxu0 }
 0xe7e   : > { %v2054_v48 = vadd.f32 %v2047_v47, %v1778_v8 }
 0xe7f   : > { %v2996_v52 = vpop.f32.mrf.mxu0 }
 0xe80   : > { %v2056_v54 = vadd.f32 %v2054_v48, %v3899_v2 }
 0xe81   : > { %v2050_v55 = vpop.f32.mrf.mxu0 }
 0xe82   : > { %v4143_v56 = vadd.f32 %v2780_v49, %v2056_v54  ;;  %v2055_v57 = vadd.f32 %v2050_v55, %v4116_v12  ;;  %v3138_v12 = vld [vmem:[%s3889_s12] sm:$0xff]   ;;  %s4307_s12 = scalar_lea.vmem [#allocation13], %s3839_s28 }
 0xe83   : > { %v2997_v58 = vpop.f32.mrf.mxu0  ;;  %3001 = vmatpush3.bf16.msra.mxu1 %v3138_v12  ;;  %v2783_v29 = vld [vmem:[%s4307_s12] ss:$0 sm:$0xff] }
 0xe84   : > { %v2057_v59 = vadd.f32 %v2055_v57, %v3901_v3  ;;  %v2069_v60 = vsel %vm841_vm1, %v4143_v56, 0.0  ;;  %v2794_v55 = vld [vmem:[%s4308_s6] ss:$0 sm:$0xff] }
 0xe85   : > { %2070 = vadd.xlane.f32.xlu1 %v2069_v60 }
 0xe86   : > { %v4149_v61 = vadd.f32 %v2780_v49, %v2057_v59 }
 0xe88   : > { %v2072_v62 = vsel %vm841_vm1, %v4149_v61, 0.0 }
 0xe89   : > { %2073 = vadd.xlane.f32.xlu0 %v2072_v62 }
 0xf0e   : > { %v2071_v2 = vpop.xlane.xlu1 %2070 }
 0xf0f   : > { %v2075_v0 = vmul.f32 0.03125, %v2071_v2 }
 0xf11   : > { %v2077_v4 = vsub.f32 %v4143_v56, %v2075_v0 }
 0xf12   : > { %v2074_v5 = vpop.xlane.xlu0 %2073 }
 0xf13   : > { %v2076_v6 = vmul.f32 0.03125, %v2074_v5  ;;  %v2079_v7 = vmul.f32 %v2077_v4, %v2077_v4 }
 0xf15   : > { %v2078_v3 = vsub.f32 %v4149_v61, %v2076_v6  ;;  %v2081_v8 = vsel %vm841_vm1, %v2079_v7, 0.0 }
 0xf16   : > { %2082 = vadd.xlane.f32.xlu0 %v2081_v8 }
 0xf17   : > { %v2080_v9 = vmul.f32 %v2078_v3, %v2078_v3 }
 0xf19   : > { %v2084_v10 = vsel %vm841_vm1, %v2080_v9, 0.0 }
 0xf1a   : > { %2085 = vadd.xlane.f32.xlu1 %v2084_v10 }
 0xf9f   : > { %v2083_v13 = vpop.xlane.xlu0 %2082 }
 0xfa0   : > { %v2087_v14 = vmul.f32 0.03125, %v2083_v13 }
 0xfa2   : > { %v2089_v15 = vadd.f32 1e-05, %v2087_v14 }
 0xfa3   : > { %v2086_v16 = vpop.xlane.xlu1 %2085 }
 0xfa4   : > { %3179 = vrsqrt.f32 %v2089_v15  ;;  %v2088_v18 = vmul.f32 0.03125, %v2086_v16 }
 0xfa6   : > { %v2090_v19 = vadd.f32 1e-05, %v2088_v18 }
 0xfa8   : > { %3181 = vrsqrt.f32 %v2090_v19 }
 0xfb1   : > { %v3180_v20 = vpop.eup %3179 }
 0xfb2   : > { %v2093_v42 = vmul.f32 %v3180_v20, %v2077_v4 }
 0xfb4   : > { %v2101_v21 = vmul.f32 %v2781_v63, %v2093_v42 }
 0xfb5   : > { %v3182_v46 = vpop.eup %3181 }
 0xfb6   : > { %v2094_v1 = vmul.f32 %v3182_v46, %v2078_v3  ;;  %v2109_v23 = vadd.f32 %v2782_v22, %v2101_v21 }
 0xfb8   : > { %v2102_v53 = vmul.f32 %v2781_v63, %v2094_v1 }
 0xfba   : > { %v2110_v24 = vadd.f32 %v2782_v22, %v2102_v53 }
 0xfbc   : > { %v2111_v25 = vpack.c.bf16 %v2110_v24, %v2109_v23 }
 0xfbe   : > { %3003 = vmatmul.mubr.msk.bf16.vlgmr.msra.gmra.mxu1 %vm841_vm1, %v2111_v25 }
0x107e   : > { %v2172_v40 = vpop.f32.mrf.mxu1 }
0x107f   : > { %v2173_v30 = vadd.f32 %v2783_v29, %v2172_v40 }
0x1080   : > { %v3004_v31 = vpop.f32.mrf.mxu1 }
0x1081   : > { %v2787_v32 = vmul.f32 -1.702, %v2173_v30 }
0x1082   : > { %v2175_v33 = vpop.f32.mrf.mxu1 }
0x1083   : > { %v2183_v34 = vmul.f32 1.442695, %v2787_v32  ;;  %v2176_v35 = vadd.f32 %v2783_v29, %v2175_v33 }
0x1084   : > { %v3005_v36 = vpop.f32.mrf.mxu1 }
0x1085   : > { %3183 = vpow2.f32 %v2183_v34  ;;  %v2788_v37 = vmul.f32 -1.702, %v2176_v35 }
0x1087   : > { %v2185_v38 = vmul.f32 1.442695, %v2788_v37 }
0x1089   : > { %3185 = vpow2.f32 %v2185_v38 }
0x1092   : > { %v3184_v39 = vpop.eup %3183 }
0x1093   : > { %v2187_v41 = vadd.f32 1.0, %v3184_v39 }
0x1095   : > { %3187 = vrcp.f32 %v2187_v41 }
0x1096   : > { %v3186_v17 = vpop.eup %3185 }
0x1097   : > { %v2188_v43 = vadd.f32 1.0, %v3186_v17 }
0x1099   : > { %3189 = vrcp.f32 %v2188_v43 }
0x10a2   : > { %v3188_v45 = vpop.eup %3187 }
0x10a3   : > { %v2193_v48 = vmul.f32 %v3188_v45, %v2173_v30 }
0x10a6   : > { %v3190_v47 = vpop.eup %3189 }
0x10a7   : > { %v2194_v49 = vmul.f32 %v3190_v47, %v2176_v35 }
0x10a9   : > { %v2195_v52 = vpack.c.bf16 %v2194_v49, %v2193_v48 }
0x10ab   : > { %3015 = vmatmul.mubr.msk.bf16.vlgmr.msra.gmra.mxu0 %vm2228_vm6, %v2195_v52 }
0x116b   : > { %v2266_v54 = vpop.f32.mrf.mxu0 }
0x116c   : > { %v2273_v57 = vadd.f32 %v2266_v54, %v4143_v56 }
0x116d   : > { %v3016_v58 = vpop.f32.mrf.mxu0 }
0x116e   : > { %v2282_v59 = vadd.f32 %v2794_v55, %v2273_v57 }
0x116f   : > { %v2269_v60 = vpop.f32.mrf.mxu0 }
0x1170   : > { %2284 = vst.msk [vmem:[#allocation2] sm:$0xff] %vm841_vm1, %v2282_v59  ;;  %v2274_v62 = vadd.f32 %v2269_v60, %v4149_v61  ;;  %2289 = sbr.rel (%p2795_p11) target bundleno = 5330 (0x14d2), region = 116 }
0x1171   : > { %v3017_v2 = vpop.f32.mrf.mxu0 }
0x1172   : > { %v2283_v0 = vadd.f32 %v2794_v55, %v2274_v62 }
0x1174   : > { %2285 = vst.msk [vmem:[#allocation2 + $0x8] sm:$0xff] %vm841_vm1, %v2283_v0 }
0x1175   : > { %v2295_v4 = vsel %vm841_vm1, %v2283_v0, 0.0  ;;  %v2292_v5 = vsel %vm841_vm1, %v2282_v59, 0.0  ;;  %v3505_v13 = vmov 0.0   ;;  %vm3506_vm7 = vmmov 0   ;;  %v3191_v14 = vld [vmem:[%s4309_s2 + $0x8] sm:$0xff]   ;;  %v3192_v29 = vld [vmem:[%s4309_s2] sm:$0xff]  }
0x1176   : > { %2296 = vadd.xlane.f32.xlu0 %v2295_v4  ;;  %3018 = vmatprep.subr.mxu0 %v3505_v13  ;;  %v2336_v63 = vstv %s2334_s17  ;;  %v2344_v46 = vstv %s2342_s16  ;;  %vm2335_vm8 = vcmp.eq.s32.totalorder %v3957_v50, 0  ;;  %vm2343_vm10 = vcmp.eq.s32.totalorder %v3957_v50, 1  ;;  %v2796_v21 = vld [vmem:[%s4310_s15] ss:$0 sm:$0xff] }
0x1177   : > { %3025 = vmatprep.subr.bf16.mxu1 %v3505_v13  ;;  %3022 = vmatprep.mubr.msk.f32.mxu0 %vm3506_vm7, %v3505_v13  ;;  %vm2337_vm9 = vcmp.eq.s32.totalorder %v3959_v51, %v2336_v63  ;;  %vm2345_vm11 = vcmp.eq.s32.totalorder %v3959_v51, %v2344_v46  ;;  %v2797_v53 = vld [vmem:[%s4311_s20] ss:$0 sm:$0xff]  ;;  %vm2349_vm14 = vcmask 130048   ;;  %vm2423_vm15 = vcmask 254976  }
0x1178   : > { %3029 = vmatprep.mubr.msk.bf16.mxu1 %vm3506_vm7, %v3505_v13  ;;  %3026 = vmatpush3.bf16.msra.mxu1 %v3191_v14  ;;  %vm2338_vm12 = vmand %vm2335_vm8, %vm2337_vm9  ;;  %vm2486_vm0 = vcmask 123904  }
0x1179   : > { %3027 = vmatprep.subr.bf16.mxu1 %v3505_v13  ;;  %vm2346_vm13 = vmand %vm2343_vm10, %vm2345_vm11  ;;  %v2339_v26 = vsel %vm2338_vm12, 1.0, %v3505_v13 }
0x117a   : > { %2293 = vadd.xlane.f32.xlu0 %v2292_v5  ;;  %v2347_v50 = vsel %vm2346_vm13, 1.0, %v3505_v13 }
0x117b   : > { %v2348_v51 = vadd.f32 %v2347_v50, %v2339_v26 }
0x117c   : > { %3028 = vmatpush3.bf16.msra.mxu1 %v3192_v29 }
0x11ff   : > { %v2297_v56 = vpop.xlane.xlu0 %2296 }
0x1200   : > { %v2299_v6 = vmul.f32 0.03125, %v2297_v56 }
0x1202   : > { %v2301_v7 = vsub.f32 %v2283_v0, %v2299_v6 }
0x1203   : > { %v2294_v3 = vpop.xlane.xlu0 %2293 }
0x1204   : > { %v2298_v8 = vmul.f32 0.03125, %v2294_v3  ;;  %v2303_v9 = vmul.f32 %v2301_v7, %v2301_v7 }
0x1206   : > { %v2300_v61 = vsub.f32 %v2282_v59, %v2298_v8  ;;  %v2307_v10 = vsel %vm841_vm1, %v2303_v9, 0.0 }
0x1207   : > { %2308 = vadd.xlane.f32.xlu1 %v2307_v10 }
0x1208   : > { %v2302_v11 = vmul.f32 %v2300_v61, %v2300_v61 }
0x120a   : > { %v2304_v12 = vsel %vm841_vm1, %v2302_v11, 0.0 }
0x120b   : > { %2305 = vadd.xlane.f32.xlu1 %v2304_v12 }
0x1290   : > { %v2309_v15 = vpop.xlane.xlu1 %2308 }
0x1291   : > { %v2311_v16 = vmul.f32 0.03125, %v2309_v15 }
0x1293   : > { %v2313_v18 = vadd.f32 1e-05, %v2311_v16 }
0x1294   : > { %v2306_v19 = vpop.xlane.xlu1 %2305 }
0x1295   : > { %3193 = vrsqrt.f32 %v2313_v18  ;;  %v2310_v20 = vmul.f32 0.03125, %v2306_v19 }
0x1297   : > { %v2312_v42 = vadd.f32 1e-05, %v2310_v20 }
0x1299   : > { %3195 = vrsqrt.f32 %v2312_v42 }
0x12a2   : > { %v3194_v1 = vpop.eup %3193 }
0x12a3   : > { %v2317_v22 = vmul.f32 %v3194_v1, %v2301_v7 }
0x12a5   : > { %v2325_v23 = vmul.f32 %v2796_v21, %v2317_v22 }
0x12a6   : > { %v3196_v24 = vpop.eup %3195 }
0x12a7   : > { %v2316_v25 = vmul.f32 %v3196_v24, %v2300_v61  ;;  %v2333_v44 = vadd.f32 %v2797_v53, %v2325_v23 }
0x12a9   : > { %v2324_v27 = vmul.f32 %v2796_v21, %v2316_v25  ;;  %3019 = vmatpush3.msra.mxu0 %v2333_v44 }
0x12aa   : > { %3020 = vmatprep.subr.mxu0 %v3505_v13 }
0x12ab   : > { %v2332_v28 = vadd.f32 %v2797_v53, %v2324_v27 }
0x12ad   : > { %3021 = vmatpush3.msra.mxu0 %v2332_v28 }
0x12ae   : > { %3023 = vmatmul.mubr.msk.f32.vlgmr.msra.gmra.mxu0 %vm2349_vm14, %v2348_v51 }
0x136e   : > { %v2419_v40 = vpop.f32.mrf.mxu0 }
0x136f   : > { %2424 = vst.msk [vmem:[#allocation16] sm:$0x3] %vm2423_vm15, %v2419_v40  ;;  %v2425_v30 = vpack.c.bf16 %v2419_v40, %v2419_v40 }
0x1370   : > { %v3024_v31 = vpop.f32.mrf.mxu0 }
0x1371   : > { %3030 = vmatmul.mubr.msk.bf16.vlgmr.msra.gmra.mxu1 %vm841_vm1, %v2425_v30 }
0x1431   : > { %v2479_v32 = vpop.f32.mrf.mxu1 }
0x1432   : > { %v2485_v33 = vmul.f32 %v2479_v32, %v2479_v32 }
0x1433   : > { %v3031_v34 = vpop.f32.mrf.mxu1 }
0x1434   : > { %v2487_v35 = vsel %vm2486_vm0, %v2485_v33, 0.0 }
0x1435   : > { %2488 = vadd.xlane.f32.xlu0 %v2487_v35  ;;  %v2482_v36 = vpop.f32.mrf.mxu1 }
0x1437   : > { %v3032_v37 = vpop.f32.mrf.mxu1 }
0x14be   : > { %v2489_v38 = vpop.xlane.xlu0 %2488 }
0x14bf   : > { %v2490_v39 = vmax.f32 %v2489_v38, 1e-12 }
0x14c1   : > { %3197 = vrsqrt.f32 %v2490_v39 }
0x14ce   : > { %v3198_v41 = vpop.eup %3197 }
0x14cf   : > { %v2492_v17 = vmul.f32 %v3198_v41, %v2479_v32 }
0x14d1   : > { %2493 = vst.msk [vmem:[#allocation17] sm:$0x3] %vm2486_vm0, %v2492_v17 }
0x14d2 PF: > { %p3078_p9 = scmp.eq.s32.totalorder %s3720_s7, 1  ;;  %s3507_s21 = smov [#allocation16]  }
0x14d3   : > { %s2501_s29 = sshll.u32 %s3507_s21, 4  ;;  %s3508_s18 = smov [#allocation17]   ;;  %s2502_s29 = int_to_ptr.vmem [resolvable:$true] %s2501_s29 }
0x14d4   : > { %s2512_s4 = sshll.u32 %s3508_s18, 4  ;;  %s3377_s10 = scalar_lea.vmem %s2502_s29, 32  ;;  %s2513_s4 = int_to_ptr.vmem [resolvable:$true] %s2512_s4 }
0x14d5   : > { %p3378_p13 = scmp.ne.s32.totalorder %s2502_s29, %s3377_s10  ;;  %p3384_p3 = scmp.lt.s32.totalorder %s2502_s29, %s2502_s29 }
0x14d6   : > { %p3385_p7 = scmp.lt.s32.totalorder %s3377_s10, %s3377_s10 }
0x14d7   : > { %p3379_p0 = pnand %p3378_p13, %p3078_p9 }
0x14d8   : > { %p3386_p8 = por %p3385_p7, %p3384_p3 }
0x14d9   : > { %p3380_p1 = pneg %p3379_p0 }
0x14db   : > { %p3387_p6 = pnand %p3386_p8, %p3380_p1 }
0x14dd   : > { %3390 = shalt.err (!%p3387_p6)
}
0x14de   : > { %s4312_s9 = sld [smem:[#allocation41_spill]]  ;;  %s3401_s12 = scalar_lea.vmem %s2513_s4, 32 }
0x14df   : > { %p3402_p2 = scmp.ne.s32.totalorder %s2513_s4, %s3401_s12  ;;  %p3408_p10 = scmp.lt.s32.totalorder %s2513_s4, %s2513_s4 }
0x14e0   : > { %p3409_p5 = scmp.lt.s32.totalorder %s3401_s12, %s3401_s12 }
0x14e1   : > { %p3403_p12 = pnand %p3402_p2, %p3078_p9 }
0x14e2   : > { %p3410_p11 = por %p3409_p5, %p3408_p10 }
0x14e3   : > { %p3404_p4 = pneg %p3403_p12 }
0x14e4   : > { %3048 = dma.vmem_to_hbm [thread:$0]  (%p3078_p9), %s2502_s29, 32, %s4312_s9, [#allocation7]  }
0x14e5   : > { %p3411_p13 = pnand %p3410_p11, %p3404_p4 }
0x14e7   : > { %3414 = shalt.err (!%p3411_p13)
}
0x14e8   : > { %s4313_s26 = sld [smem:[#allocation42_spill]] }
0x14ee   : > { %3050 = dma.vmem_to_hbm [thread:$0]  (%p3078_p9), %s2513_s4, 32, %s4313_s26, [#allocation18]  }
0x14ef   : > { %3460 = dma.done.wait (%p3078_p9), [#allocation7], 32  }
0x14f0   : > { %3462 = vsyncadd (%p3078_p9), [#allocation7], 4294967264 }
0x14f1   : > { %3464 = dma.done.wait (%p3078_p9), [#allocation18], 32  }
0x14f2   : > { %3466 = vsyncadd (%p3078_p9), [#allocation18], 4294967264 }
0x14f3 PF: > { %s4314_s21 = sld [smem:[#allocation27_spill]]  ;;  %s4317_s19 = smov %s3473_s1 }
0x14f4   : > { %s4315_s23 = sld [smem:[#allocation26_spill]] }
0x14f5   : > { %s4316_s20 = sld [smem:[#allocation28_spill]] }
0x14f9   : > { %p44_p0 = scmp.ge.s32.totalorder %s4314_s21, 4  }
0x14fa   : > { %s4318_s1 = smov %s4315_s23 }
0x14fb   :  { %46 = sbr.rel (!%p44_p0) target bundleno = 45 (0x2d), region = 214 }
0x1500   :  { %2529 = vsyncpa [#allocation6], 1 }
0x1501   :  { %2531 = vsyncpa [#allocation6 + $0x1], 1 }
0x1502   :  { %2532 = vsyncpa [#allocation9], 1 }
0x1503   :  { %2534 = vsyncpa [#allocation9 + $0x1], 1 }
0x1504   :  { %2535 = vsyncpa [#allocation12], 1 }
0x1505   :  { %2537 = vsyncpa [#allocation12 + $0x1], 1 }
0x1506   :  { %2538 = vsyncpa [#allocation15], 1 }
0x1507   :  { %2540 = vsyncpa [#allocation15 + $0x1], 1 }
0x1508   :  { %2541 = vsyncpa [#allocation7], 1 }
0x1509   :  { %2543 = vsyncpa [#allocation7 + $0x1], 1 }
0x150a   :  { %2544 = vsyncpa [#allocation18], 1 }

</bundles_post_ra>
